<compile_context>
chip_gen: v6e
topology: v6e:2x2x1
jax: 0.10.0
libtpu: 0.0.40
codegen_flags: <defaults>
</compile_context>

<pallas_src>
import jax
import jax.numpy as jnp
from jax import lax
from jax.experimental import pallas as pl
from jax.experimental.pallas import tpu as pltpu

EPS = 1e-5
# Target M rows per MXU matmul.  128 is a good default on v5e/v6e/v7x; the
# row-shift matmuls grow as M^2 so we do not push to 256 by default.
MAX_ROWS_PER_TILE = 128


# ------------------------------ kernel body ---------------------------------
def _make_block_kernel(has_proj):
    """Fused kernel for one batch tile, fully in the row-flattened
    (rows = B_TILE*H, lanes = W*C) layout.  Vertical conv taps are produced by
    block-diagonal 0/1 row-shift matrices on the MXU -- no sublane-offset
    slicing, no padded VMEM scratch, no store/load round trip."""

    def kernel(x_ref, sdn_ref, sup_ref, t1_ref, s1_ref, b1_ref,
               t2_ref, s2_ref, b2_ref, *rest):
        if has_proj:
            ws_ref, bs_ref, out_ref = rest
        else:
            (out_ref,) = rest

        f32 = jnp.float32
        x = x_ref[...]                       # (M, W*Cin), lane-dense
        sdn = sdn_ref[...]                   # (M, M): row i <- row i-1 (same image)
        sup = sup_ref[...]                   # (M, M): row i <- row i+1 (same image)

        # ---- conv1: vertical taps via MXU row shifts + 3 banded matmuls ----
        x_dn = jnp.dot(sdn, x, preferred_element_type=f32)
        x_up = jnp.dot(sup, x, preferred_element_type=f32)
        h1 = jnp.dot(x_dn, t1_ref[0], preferred_element_type=f32)
        h1 += jnp.dot(x, t1_ref[1], preferred_element_type=f32)
        h1 += jnp.dot(x_up, t1_ref[2], preferred_element_type=f32)

        # ---- bn1 (folded per-lane scale/bias) + relu ------------------------
        h1 = jnp.maximum(h1 * s1_ref[...] + b1_ref[...], 0.0)   # (M, W*Cmid)

        # ---- conv2: same scheme, no VMEM scratch round trip -----------------
        h1_dn = jnp.dot(sdn, h1, preferred_element_type=f32)
        h1_up = jnp.dot(sup, h1, preferred_element_type=f32)
        h2 = jnp.dot(h1_dn, t2_ref[0], preferred_element_type=f32)
        h2 += jnp.dot(h1, t2_ref[1], preferred_element_type=f32)
        h2 += jnp.dot(h1_up, t2_ref[2], preferred_element_type=f32)

        # ---- bn2 (folded) ----------------------------------------------------
        h2 = h2 * s2_ref[...] + b2_ref[...]                      # (M, W*Cout)

        # ---- shortcut --------------------------------------------------------
        if has_proj:
            sc = jnp.dot(x, ws_ref[...], preferred_element_type=f32) + bs_ref[...]
        else:
            sc = x                            # Cin == Cout: identity shortcut

        # ---- residual add + relu; lane-dense (M, W*Cout) output store --------
        out_ref[...] = jnp.maximum(h2 + sc, 0.0)

    return kernel


# ---------------------------- wrapper helpers --------------------------------
def _fold_bn(conv_bias, gamma, beta, mean, var):
    """Fold conv bias + eval-mode batchnorm into per-channel scale, bias."""
    scale = gamma / jnp.sqrt(var + EPS)
    bias = (conv_bias - mean) * scale + beta
    return scale, bias


def _tile_lane(v, W):
    """Per-channel vector -> per-lane (1, W*C) row for the flattened layout."""
    return jnp.tile(v, W).reshape(1, -1)


def _conv3x3_band_matrices(w_hwio, W):
    """Fold a 3x3 'SAME' conv (HWIO weights) into 3 banded matrices T[dy] of
    shape (W*Cin, W*Cout) acting on the row-flattened (w, c) lane layout.
    Horizontal zero padding is encoded in the band structure."""
    _, _, ci, co = w_hwio.shape
    mats = []
    for dy in range(3):
        t = jnp.zeros((W * ci, W * co), jnp.float32)
        for dx in range(3):
            # sel[w_in, w_out] = 1  iff  w_in == w_out + dx - 1
            sel = jnp.eye(W, k=1 - dx, dtype=jnp.float32)
            t = t + jnp.kron(sel, w_hwio[dy, dx].astype(jnp.float32))
        mats.append(t)
    return jnp.stack(mats)                    # (3, W*Cin, W*Cout)


def _row_shift_matrices(b_tile, h):
    """Block-diagonal 0/1 matrices (M, M), M = b_tile*h, implementing the
    within-image row shifts (with zero fill at image borders) on the MXU."""
    m = b_tile * h
    r = jnp.arange(m)
    same_img = (r[:, None] // h) == (r[None, :] // h)
    dn = ((r[:, None] == r[None, :] + 1) & same_img).astype(jnp.float32)
    up = ((r[:, None] + 1 == r[None, :]) & same_img).astype(jnp.float32)
    return dn, up


def _pick_batch_tile(n, h, max_rows=MAX_ROWS_PER_TILE):
    """Largest divisor of N such that B_TILE*H <= max_rows and the block's
    sublane dim stays 8-aligned (or covers the full array)."""
    best = None
    for d in range(1, n + 1):
        if n % d == 0 and d * h <= max_rows and (d * h) % 8 == 0:
            best = d
    if best is None:
        best = n
    return best


def _block_pallas_call(kernel, N, H, W, Cin, Cmid, Cout, b_tile, has_proj,
                       single_buffer_weights):
    M = b_tile * H

    def _const(shape):
        nd = len(shape)
        index_map = lambda n, _nd=nd: (0,) * _nd
        if single_buffer_weights and hasattr(pl, "Buffered"):
            # Grid-invariant operand: no point double-buffering it in VMEM.
            return pl.BlockSpec(shape, index_map, pipeline_mode=pl.Buffered(1))
        return pl.BlockSpec(shape, index_map)

    in_specs = [
        pl.BlockSpec((M, W * Cin), lambda n: (n, 0)),        # activations
        _const((M, M)),                                      # row-shift down
        _const((M, M)),                                      # row-shift up
        _const((3, W * Cin, W * Cmid)),                      # conv1 bands
        _const((1, W * Cmid)), _const((1, W * Cmid)),        # bn1 scale/bias
        _const((3, W * Cmid, W * Cout)),                     # conv2 bands
        _const((1, W * Cout)), _const((1, W * Cout)),        # bn2 scale/bias
    ]
    if has_proj:
        in_specs += [_const((W * Cin, W * Cout)),            # 1x1 projection
                     _const((1, W * Cout))]

    steps = N // b_tile
    flops = steps * 2 * M * (
        2 * M * W * Cin + 2 * M * W * Cmid
        + 3 * W * Cin * W * Cmid + 3 * W * Cmid * W * Cout
        + (W * Cin * W * Cout if has_proj else 0))
    bytes_accessed = 4 * (N * H * W * (Cin + Cout) + 2 * M * M
                          + 3 * W * W * Cin * Cmid + 3 * W * W * Cmid * Cout
                          + (W * W * Cin * Cout if has_proj else 0))

    return pl.pallas_call(
        kernel,
        out_shape=jax.ShapeDtypeStruct((N * H, W * Cout), jnp.float32),
        grid_spec=pltpu.PrefetchScalarGridSpec(
            num_scalar_prefetch=0,
            grid=(steps,),
            in_specs=in_specs,
            out_specs=pl.BlockSpec((M, W * Cout), lambda n: (n, 0)),
        ),
        compiler_params=pltpu.CompilerParams(
            dimension_semantics=("parallel",)),  # batch tiles shard across TCs
        cost_estimate=pl.CostEstimate(flops=flops, transcendentals=0,
                                      bytes_accessed=bytes_accessed),
    )


def block_forward(x_nchw, params):
    """x_nchw: (N, Cin, H, W) float32. Returns (N, Cout, H, W) float32."""
    N, Cin, H, W = x_nchw.shape
    Cout = params["w2"].shape[-1]
    Cmid = params["w1"].shape[-1]
    has_proj = Cin != Cout
    b_tile = _pick_batch_tile(N, H)

    # NCHW -> NHWC -> row-flattened (N*H, W*Cin).  No jnp.pad in the wrapper:
    # vertical zero padding is handled in-kernel by the row-shift matrices.
    x = jnp.transpose(x_nchw, (0, 2, 3, 1)).astype(jnp.float32)
    x = x.reshape(N * H, W * Cin)

    s1, b1 = _fold_bn(params["b1conv"], params["g1"], params["beta1"],
                      params["m1"], params["v1"])
    s2, b2 = _fold_bn(params["b2conv"], params["g2"], params["beta2"],
                      params["m2"], params["v2"])
    t1 = _conv3x3_band_matrices(params["w1"], W)   # (3, W*Cin,  W*Cmid)
    t2 = _conv3x3_band_matrices(params["w2"], W)   # (3, W*Cmid, W*Cout)
    sdn, sup = _row_shift_matrices(b_tile, H)      # (M, M) each

    inputs = [x, sdn, sup,
              t1, _tile_lane(s1, W), _tile_lane(b1, W),
              t2, _tile_lane(s2, W), _tile_lane(b2, W)]
    if has_proj:
        # 1x1 projection as a block-diagonal (W*Cin, W*Cout) matrix.
        ws_band = jnp.kron(jnp.eye(W, dtype=jnp.float32),
                           params["ws"].astype(jnp.float32))
        inputs += [ws_band, _tile_lane(params["bs"], W)]

    kernel = _make_block_kernel(has_proj)
    args = (kernel, N, H, W, Cin, Cmid, Cout, b_tile, has_proj)
    try:
        y_flat = _block_pallas_call(*args, single_buffer_weights=True)(*inputs)
    except Exception:
        # TODO(synk): pl.Buffered(1) single-buffering unavailable in this jax
        # build -- fall back to default double-buffered BlockSpecs.
        y_flat = _block_pallas_call(*args, single_buffer_weights=False)(*inputs)

    y = y_flat.reshape(N, H, W, Cout)
    return jnp.transpose(y, (0, 3, 1, 2))          # back to NCHW


# --------------------------- reference (plain JAX) ---------------------------
def block_forward_ref(x_nchw, params):
    x = jnp.transpose(x_nchw, (0, 2, 3, 1)).astype(jnp.float32)  # NHWC
    dn = ("NHWC", "HWIO", "NHWC")

    def bn(h, g, beta, m, v):
        return (h - m) / jnp.sqrt(v + EPS) * g + beta

    h = lax.conv_general_dilated(x, params["w1"], (1, 1), "SAME",
                                 dimension_numbers=dn) + params["b1conv"]
    h = jax.nn.relu(bn(h, params["g1"], params["beta1"], params["m1"], params["v1"]))
    h = lax.conv_general_dilated(h, params["w2"], (1, 1), "SAME",
                                 dimension_numbers=dn) + params["b2conv"]
    h = bn(h, params["g2"], params["beta2"], params["m2"], params["v2"])
    Cin, Cout = x.shape[-1], params["w2"].shape[-1]
    if Cin != Cout:
        sc = lax.conv_general_dilated(x, params["ws"].reshape(1, 1, Cin, Cout),
                                      (1, 1), "SAME",
                                      dimension_numbers=dn) + params["bs"]
    else:
        sc = x
    y = jax.nn.relu(h + sc)
    return jnp.transpose(y, (0, 3, 1, 2))


# --------------------------- deterministic params ---------------------------
def make_params(key, channels_in, channels_out):
    cmid = channels_out // 4
    ks = jax.random.split(key, 12)
    p = {
        "w1": 0.1 * jax.random.normal(ks[0], (3, 3, channels_in, cmid), jnp.float32),
        "b1conv": 0.1 * jax.random.normal(ks[1], (cmid,), jnp.float32),
        "g1": 1.0 + 0.1 * jax.random.normal(ks[2], (cmid,), jnp.float32),
        "beta1": 0.1 * jax.random.normal(ks[3], (cmid,), jnp.float32),
        "m1": 0.1 * jax.random.normal(ks[4], (cmid,), jnp.float32),
        "v1": jax.random.uniform(ks[5], (cmid,), jnp.float32, 0.5, 1.5),
        "w2": 0.1 * jax.random.normal(ks[6], (3, 3, cmid, channels_out), jnp.float32),
        "b2conv": 0.1 * jax.random.normal(ks[7], (channels_out,), jnp.float32),
        "g2": 1.0 + 0.1 * jax.random.normal(ks[8], (channels_out,), jnp.float32),
        "beta2": 0.1 * jax.random.normal(ks[9], (channels_out,), jnp.float32),
        "m2": 0.1 * jax.random.normal(ks[10], (channels_out,), jnp.float32),
        "v2": jax.random.uniform(ks[11], (channels_out,), jnp.float32, 0.5, 1.5),
    }
    if channels_in != channels_out:
        k1, k2 = jax.random.split(jax.random.fold_in(key, 99))
        p["ws"] = 0.1 * jax.random.normal(k1, (channels_in, channels_out), jnp.float32)
        p["bs"] = 0.1 * jax.random.normal(k2, (channels_out,), jnp.float32)
    return p


if __name__ == "__main__":
    key = jax.random.PRNGKey(0)

    # Case 1: channels_in != channels_out -> 1x1-conv projection shortcut.
    N, Cin, Cout, H, W = 2, 4, 16, 16, 16
    kx, kp = jax.random.split(key)
    x = jax.random.normal(kx, (N, Cin, H, W), jnp.float32)
    params = make_params(kp, Cin, Cout)
    y = jax.block_until_ready(block_forward(x, params))
    y_ref = block_forward_ref(x, params)
    assert y.shape == (N, Cout, H, W)
    assert jnp.allclose(y, y_ref, atol=1e-4, rtol=1e-4), "projection-block mismatch"

    # Case 2: channels_in == channels_out -> identity shortcut.
    Cin2 = Cout2 = 16
    kx2, kp2 = jax.random.split(jax.random.fold_in(key, 1))
    x2 = jax.random.normal(kx2, (N, Cin2, H, W), jnp.float32)
    params2 = make_params(kp2, Cin2, Cout2)
    y2 = jax.block_until_ready(block_forward(x2, params2))
    y2_ref = block_forward_ref(x2, params2)
    assert y2.shape == (N, Cout2, H, W)
    assert jnp.allclose(y2, y2_ref, atol=1e-4, rtol=1e-4), "identity-block mismatch"

    print("KERNEL_OK")
</pallas_src>

<mosaic_0001>
module attributes {stable_mosaic.version = 11 : i64} {
  func.func @kernel(%arg0: i32, %arg1: memref<32x64xf32, #tpu.memory_space<vmem>>, %arg2: memref<32x32xf32, #tpu.memory_space<vmem>>, %arg3: memref<32x32xf32, #tpu.memory_space<vmem>>, %arg4: memref<3x64x64xf32, #tpu.memory_space<vmem>>, %arg5: memref<1x64xf32, #tpu.memory_space<vmem>>, %arg6: memref<1x64xf32, #tpu.memory_space<vmem>>, %arg7: memref<3x64x256xf32, #tpu.memory_space<vmem>>, %arg8: memref<1x256xf32, #tpu.memory_space<vmem>>, %arg9: memref<1x256xf32, #tpu.memory_space<vmem>>, %arg10: memref<64x256xf32, #tpu.memory_space<vmem>>, %arg11: memref<1x256xf32, #tpu.memory_space<vmem>>, %arg12: memref<32x256xf32, #tpu.memory_space<vmem>>) attributes {dimension_semantics = [#tpu.dimension_semantics<parallel>], iteration_bounds = array<i64: 1>, scalar_prefetch = 0 : i64, scratch_operands = 0 : i64, tpu.core_type = #tpu.core_type<tc>, window_params = [{transform_indices = @transform_0, window_bounds = array<i64: 32, 64>}, {pipeline_mode = #tpu.pipeline_mode<synchronous>, transform_indices = @transform_1, window_bounds = array<i64: 32, 32>}, {pipeline_mode = #tpu.pipeline_mode<synchronous>, transform_indices = @transform_2, window_bounds = array<i64: 32, 32>}, {pipeline_mode = #tpu.pipeline_mode<synchronous>, transform_indices = @transform_3, window_bounds = array<i64: 3, 64, 64>}, {pipeline_mode = #tpu.pipeline_mode<synchronous>, transform_indices = @transform_4, window_bounds = array<i64: 1, 64>}, {pipeline_mode = #tpu.pipeline_mode<synchronous>, transform_indices = @transform_5, window_bounds = array<i64: 1, 64>}, {pipeline_mode = #tpu.pipeline_mode<synchronous>, transform_indices = @transform_6, window_bounds = array<i64: 3, 64, 256>}, {pipeline_mode = #tpu.pipeline_mode<synchronous>, transform_indices = @transform_7, window_bounds = array<i64: 1, 256>}, {pipeline_mode = #tpu.pipeline_mode<synchronous>, transform_indices = @transform_8, window_bounds = array<i64: 1, 256>}, {pipeline_mode = #tpu.pipeline_mode<synchronous>, transform_indices = @transform_9, window_bounds = array<i64: 64, 256>}, {pipeline_mode = #tpu.pipeline_mode<synchronous>, transform_indices = @transform_10, window_bounds = array<i64: 1, 256>}, {transform_indices = @transform_11, window_bounds = array<i64: 32, 256>}]} {
    %c0 = arith.constant 0 : index
    %c0_0 = arith.constant 0 : index
    %0 = vector.load %arg1[%c0, %c0_0] : memref<32x64xf32, #tpu.memory_space<vmem>>, vector<32x64xf32>
    %c0_1 = arith.constant 0 : index
    %c0_2 = arith.constant 0 : index
    %1 = vector.load %arg2[%c0_1, %c0_2] : memref<32x32xf32, #tpu.memory_space<vmem>>, vector<32x32xf32>
    %c0_3 = arith.constant 0 : index
    %c0_4 = arith.constant 0 : index
    %2 = vector.load %arg3[%c0_3, %c0_4] : memref<32x32xf32, #tpu.memory_space<vmem>>, vector<32x32xf32>
    %cst = arith.constant dense<0.000000e+00> : vector<32x64xf32>
    %3 = tpu.matmul %1, %0, %cst {dimension_numbers = #tpu.dot_dimension_numbers<[1], [0], [0], [1], [0, 0, 1, 1], [], []>} : vector<32x32xf32>, vector<32x64xf32>, vector<32x64xf32> -> vector<32x64xf32>
    %cst_5 = arith.constant dense<0.000000e+00> : vector<32x64xf32>
    %4 = tpu.matmul %2, %0, %cst_5 {dimension_numbers = #tpu.dot_dimension_numbers<[1], [0], [0], [1], [0, 0, 1, 1], [], []>} : vector<32x32xf32>, vector<32x64xf32>, vector<32x64xf32> -> vector<32x64xf32>
    %c0_6 = arith.constant 0 : index
    %c0_7 = arith.constant 0 : index
    %c0_8 = arith.constant 0 : index
    %5 = vector.load %arg4[%c0_6, %c0_7, %c0_8] : memref<3x64x64xf32, #tpu.memory_space<vmem>>, vector<1x64x64xf32>
    %6 = vector.shape_cast %5 : vector<1x64x64xf32> to vector<64x64xf32>
    %cst_9 = arith.constant dense<0.000000e+00> : vector<32x64xf32>
    %7 = tpu.matmul %3, %6, %cst_9 {dimension_numbers = #tpu.dot_dimension_numbers<[1], [0], [0], [1], [0, 0, 1, 1], [], []>} : vector<32x64xf32>, vector<64x64xf32>, vector<32x64xf32> -> vector<32x64xf32>
    %c1 = arith.constant 1 : index
    %c0_10 = arith.constant 0 : index
    %c0_11 = arith.constant 0 : index
    %8 = vector.load %arg4[%c1, %c0_10, %c0_11] : memref<3x64x64xf32, #tpu.memory_space<vmem>>, vector<1x64x64xf32>
    %9 = vector.shape_cast %8 : vector<1x64x64xf32> to vector<64x64xf32>
    %cst_12 = arith.constant dense<0.000000e+00> : vector<32x64xf32>
    %10 = tpu.matmul %0, %9, %cst_12 {dimension_numbers = #tpu.dot_dimension_numbers<[1], [0], [0], [1], [0, 0, 1, 1], [], []>} : vector<32x64xf32>, vector<64x64xf32>, vector<32x64xf32> -> vector<32x64xf32>
    %11 = arith.addf %7, %10 : vector<32x64xf32>
    %c2 = arith.constant 2 : index
    %c0_13 = arith.constant 0 : index
    %c0_14 = arith.constant 0 : index
    %12 = vector.load %arg4[%c2, %c0_13, %c0_14] : memref<3x64x64xf32, #tpu.memory_space<vmem>>, vector<1x64x64xf32>
    %13 = vector.shape_cast %12 : vector<1x64x64xf32> to vector<64x64xf32>
    %cst_15 = arith.constant dense<0.000000e+00> : vector<32x64xf32>
    %14 = tpu.matmul %4, %13, %cst_15 {dimension_numbers = #tpu.dot_dimension_numbers<[1], [0], [0], [1], [0, 0, 1, 1], [], []>} : vector<32x64xf32>, vector<64x64xf32>, vector<32x64xf32> -> vector<32x64xf32>
    %15 = arith.addf %11, %14 : vector<32x64xf32>
    %c0_16 = arith.constant 0 : index
    %c0_17 = arith.constant 0 : index
    %16 = vector.load %arg5[%c0_16, %c0_17] : memref<1x64xf32, #tpu.memory_space<vmem>>, vector<1x64xf32>
    %17 = vector.broadcast %16 : vector<1x64xf32> to vector<32x64xf32>
    %18 = arith.mulf %15, %17 : vector<32x64xf32>
    %c0_18 = arith.constant 0 : index
    %c0_19 = arith.constant 0 : index
    %19 = vector.load %arg6[%c0_18, %c0_19] : memref<1x64xf32, #tpu.memory_space<vmem>>, vector<1x64xf32>
    %20 = vector.broadcast %19 : vector<1x64xf32> to vector<32x64xf32>
    %21 = arith.addf %18, %20 : vector<32x64xf32>
    %cst_20 = arith.constant 0.000000e+00 : f32
    %22 = vector.broadcast %cst_20 : f32 to vector<32x64xf32>
    %23 = arith.maximumf %21, %22 : vector<32x64xf32>
    %cst_21 = arith.constant dense<0.000000e+00> : vector<32x64xf32>
    %24 = tpu.matmul %1, %23, %cst_21 {dimension_numbers = #tpu.dot_dimension_numbers<[1], [0], [0], [1], [0, 0, 1, 1], [], []>} : vector<32x32xf32>, vector<32x64xf32>, vector<32x64xf32> -> vector<32x64xf32>
    %cst_22 = arith.constant dense<0.000000e+00> : vector<32x64xf32>
    %25 = tpu.matmul %2, %23, %cst_22 {dimension_numbers = #tpu.dot_dimension_numbers<[1], [0], [0], [1], [0, 0, 1, 1], [], []>} : vector<32x32xf32>, vector<32x64xf32>, vector<32x64xf32> -> vector<32x64xf32>
    %c0_23 = arith.constant 0 : index
    %c0_24 = arith.constant 0 : index
    %c0_25 = arith.constant 0 : index
    %26 = vector.load %arg7[%c0_23, %c0_24, %c0_25] : memref<3x64x256xf32, #tpu.memory_space<vmem>>, vector<1x64x256xf32>
    %27 = vector.shape_cast %26 : vector<1x64x256xf32> to vector<64x256xf32>
    %cst_26 = arith.constant dense<0.000000e+00> : vector<32x256xf32>
    %28 = tpu.matmul %24, %27, %cst_26 {dimension_numbers = #tpu.dot_dimension_numbers<[1], [0], [0], [1], [0, 0, 1, 1], [], []>} : vector<32x64xf32>, vector<64x256xf32>, vector<32x256xf32> -> vector<32x256xf32>
    %c1_27 = arith.constant 1 : index
    %c0_28 = arith.constant 0 : index
    %c0_29 = arith.constant 0 : index
    %29 = vector.load %arg7[%c1_27, %c0_28, %c0_29] : memref<3x64x256xf32, #tpu.memory_space<vmem>>, vector<1x64x256xf32>
    %30 = vector.shape_cast %29 : vector<1x64x256xf32> to vector<64x256xf32>
    %cst_30 = arith.constant dense<0.000000e+00> : vector<32x256xf32>
    %31 = tpu.matmul %23, %30, %cst_30 {dimension_numbers = #tpu.dot_dimension_numbers<[1], [0], [0], [1], [0, 0, 1, 1], [], []>} : vector<32x64xf32>, vector<64x256xf32>, vector<32x256xf32> -> vector<32x256xf32>
    %32 = arith.addf %28, %31 : vector<32x256xf32>
    %c2_31 = arith.constant 2 : index
    %c0_32 = arith.constant 0 : index
    %c0_33 = arith.constant 0 : index
    %33 = vector.load %arg7[%c2_31, %c0_32, %c0_33] : memref<3x64x256xf32, #tpu.memory_space<vmem>>, vector<1x64x256xf32>
    %34 = vector.shape_cast %33 : vector<1x64x256xf32> to vector<64x256xf32>
    %cst_34 = arith.constant dense<0.000000e+00> : vector<32x256xf32>
    %35 = tpu.matmul %25, %34, %cst_34 {dimension_numbers = #tpu.dot_dimension_numbers<[1], [0], [0], [1], [0, 0, 1, 1], [], []>} : vector<32x64xf32>, vector<64x256xf32>, vector<32x256xf32> -> vector<32x256xf32>
    %36 = arith.addf %32, %35 : vector<32x256xf32>
    %c0_35 = arith.constant 0 : index
    %c0_36 = arith.constant 0 : index
    %37 = vector.load %arg8[%c0_35, %c0_36] : memref<1x256xf32, #tpu.memory_space<vmem>>, vector<1x256xf32>
    %38 = vector.broadcast %37 : vector<1x256xf32> to vector<32x256xf32>
    %39 = arith.mulf %36, %38 : vector<32x256xf32>
    %c0_37 = arith.constant 0 : index
    %c0_38 = arith.constant 0 : index
    %40 = vector.load %arg9[%c0_37, %c0_38] : memref<1x256xf32, #tpu.memory_space<vmem>>, vector<1x256xf32>
    %41 = vector.broadcast %40 : vector<1x256xf32> to vector<32x256xf32>
    %42 = arith.addf %39, %41 : vector<32x256xf32>
    %c0_39 = arith.constant 0 : index
    %c0_40 = arith.constant 0 : index
    %43 = vector.load %arg10[%c0_39, %c0_40] : memref<64x256xf32, #tpu.memory_space<vmem>>, vector<64x256xf32>
    %cst_41 = arith.constant dense<0.000000e+00> : vector<32x256xf32>
    %44 = tpu.matmul %0, %43, %cst_41 {dimension_numbers = #tpu.dot_dimension_numbers<[1], [0], [0], [1], [0, 0, 1, 1], [], []>} : vector<32x64xf32>, vector<64x256xf32>, vector<32x256xf32> -> vector<32x256xf32>
    %c0_42 = arith.constant 0 : index
    %c0_43 = arith.constant 0 : index
    %45 = vector.load %arg11[%c0_42, %c0_43] : memref<1x256xf32, #tpu.memory_space<vmem>>, vector<1x256xf32>
    %46 = vector.broadcast %45 : vector<1x256xf32> to vector<32x256xf32>
    %47 = arith.addf %44, %46 : vector<32x256xf32>
    %48 = arith.addf %42, %47 : vector<32x256xf32>
    %cst_44 = arith.constant 0.000000e+00 : f32
    %49 = vector.broadcast %cst_44 : f32 to vector<32x256xf32>
    %50 = arith.maximumf %48, %49 : vector<32x256xf32>
    %c0_45 = arith.constant 0 : index
    %c0_46 = arith.constant 0 : index
    %51 = vector.load %arg12[%c0_45, %c0_46] : memref<32x256xf32, #tpu.memory_space<vmem>>, vector<32x256xf32>
    tpu.vector_store %arg12[%c0_45, %c0_46], %50 {strides = array<i32>} : memref<32x256xf32, #tpu.memory_space<vmem>>, vector<32x256xf32>,
    return
  }
  func.func @transform_0(%arg0: i32) -> (i32, i32) {
    %c0_i32 = arith.constant 0 : i32
    %c0_i32_0 = arith.constant 0 : i32
    return %arg0, %c0_i32 : i32, i32
  }
  func.func @transform_1(%arg0: i32) -> (i32, i32) {
    %c0_i32 = arith.constant 0 : i32
    %c0_i32_0 = arith.constant 0 : i32
    %c0_i32_1 = arith.constant 0 : i32
    return %c0_i32, %c0_i32_0 : i32, i32
  }
  func.func @transform_2(%arg0: i32) -> (i32, i32) {
    %c0_i32 = arith.constant 0 : i32
    %c0_i32_0 = arith.constant 0 : i32
    %c0_i32_1 = arith.constant 0 : i32
    return %c0_i32, %c0_i32_0 : i32, i32
  }
  func.func @transform_3(%arg0: i32) -> (i32, i32, i32) {
    %c0_i32 = arith.constant 0 : i32
    %c0_i32_0 = arith.constant 0 : i32
    %c0_i32_1 = arith.constant 0 : i32
    %c0_i32_2 = arith.constant 0 : i32
    return %c0_i32, %c0_i32_0, %c0_i32_1 : i32, i32, i32
  }
  func.func @transform_4(%arg0: i32) -> (i32, i32) {
    %c0_i32 = arith.constant 0 : i32
    %c0_i32_0 = arith.constant 0 : i32
    %c0_i32_1 = arith.constant 0 : i32
    return %c0_i32, %c0_i32_0 : i32, i32
  }
  func.func @transform_5(%arg0: i32) -> (i32, i32) {
    %c0_i32 = arith.constant 0 : i32
    %c0_i32_0 = arith.constant 0 : i32
    %c0_i32_1 = arith.constant 0 : i32
    return %c0_i32, %c0_i32_0 : i32, i32
  }
  func.func @transform_6(%arg0: i32) -> (i32, i32, i32) {
    %c0_i32 = arith.constant 0 : i32
    %c0_i32_0 = arith.constant 0 : i32
    %c0_i32_1 = arith.constant 0 : i32
    %c0_i32_2 = arith.constant 0 : i32
    return %c0_i32, %c0_i32_0, %c0_i32_1 : i32, i32, i32
  }
  func.func @transform_7(%arg0: i32) -> (i32, i32) {
    %c0_i32 = arith.constant 0 : i32
    %c0_i32_0 = arith.constant 0 : i32
    %c0_i32_1 = arith.constant 0 : i32
    return %c0_i32, %c0_i32_0 : i32, i32
  }
  func.func @transform_8(%arg0: i32) -> (i32, i32) {
    %c0_i32 = arith.constant 0 : i32
    %c0_i32_0 = arith.constant 0 : i32
    %c0_i32_1 = arith.constant 0 : i32
    return %c0_i32, %c0_i32_0 : i32, i32
  }
  func.func @transform_9(%arg0: i32) -> (i32, i32) {
    %c0_i32 = arith.constant 0 : i32
    %c0_i32_0 = arith.constant 0 : i32
    %c0_i32_1 = arith.constant 0 : i32
    return %c0_i32, %c0_i32_0 : i32, i32
  }
  func.func @transform_10(%arg0: i32) -> (i32, i32) {
    %c0_i32 = arith.constant 0 : i32
    %c0_i32_0 = arith.constant 0 : i32
    %c0_i32_1 = arith.constant 0 : i32
    return %c0_i32, %c0_i32_0 : i32, i32
  }
  func.func @transform_11(%arg0: i32) -> (i32, i32) {
    %c0_i32 = arith.constant 0 : i32
    %c0_i32_0 = arith.constant 0 : i32
    return %arg0, %c0_i32 : i32, i32
  }
}

module attributes {stable_mosaic.version = 11 : i64} {
  func.func @kernel(%arg0: i32, %arg1: memref<32x64xf32, #tpu.memory_space<vmem>>, %arg2: memref<32x32xf32, #tpu.memory_space<vmem>>, %arg3: memref<32x32xf32, #tpu.memory_space<vmem>>, %arg4: memref<3x64x64xf32, #tpu.memory_space<vmem>>, %arg5: memref<1x64xf32, #tpu.memory_space<vmem>>, %arg6: memref<1x64xf32, #tpu.memory_space<vmem>>, %arg7: memref<3x64x256xf32, #tpu.memory_space<vmem>>, %arg8: memref<1x256xf32, #tpu.memory_space<vmem>>, %arg9: memref<1x256xf32, #tpu.memory_space<vmem>>, %arg10: memref<64x256xf32, #tpu.memory_space<vmem>>, %arg11: memref<1x256xf32, #tpu.memory_space<vmem>>, %arg12: memref<32x256xf32, #tpu.memory_space<vmem>>) attributes {dimension_semantics = [#tpu.dimension_semantics<parallel>], iteration_bounds = array<i64: 1>, scalar_prefetch = 0 : i64, scratch_operands = 0 : i64, tpu.core_type = #tpu.core_type<tc>, window_params = [{transform_indices = @transform_0, window_bounds = array<i64: 32, 64>}, {pipeline_mode = #tpu.pipeline_mode<synchronous>, transform_indices = @transform_1, window_bounds = array<i64: 32, 32>}, {pipeline_mode = #tpu.pipeline_mode<synchronous>, transform_indices = @transform_2, window_bounds = array<i64: 32, 32>}, {pipeline_mode = #tpu.pipeline_mode<synchronous>, transform_indices = @transform_3, window_bounds = array<i64: 3, 64, 64>}, {pipeline_mode = #tpu.pipeline_mode<synchronous>, transform_indices = @transform_4, window_bounds = array<i64: 1, 64>}, {pipeline_mode = #tpu.pipeline_mode<synchronous>, transform_indices = @transform_5, window_bounds = array<i64: 1, 64>}, {pipeline_mode = #tpu.pipeline_mode<synchronous>, transform_indices = @transform_6, window_bounds = array<i64: 3, 64, 256>}, {pipeline_mode = #tpu.pipeline_mode<synchronous>, transform_indices = @transform_7, window_bounds = array<i64: 1, 256>}, {pipeline_mode = #tpu.pipeline_mode<synchronous>, transform_indices = @transform_8, window_bounds = array<i64: 1, 256>}, {pipeline_mode = #tpu.pipeline_mode<synchronous>, transform_indices = @transform_9, window_bounds = array<i64: 64, 256>}, {pipeline_mode = #tpu.pipeline_mode<synchronous>, transform_indices = @transform_10, window_bounds = array<i64: 1, 256>}, {transform_indices = @transform_11, window_bounds = array<i64: 32, 256>}]} {
    %c0 = arith.constant 0 : index
    %c0_0 = arith.constant 0 : index
    %0 = vector.load %arg1[%c0, %c0_0] : memref<32x64xf32, #tpu.memory_space<vmem>>, vector<32x64xf32>
    %c0_1 = arith.constant 0 : index
    %c0_2 = arith.constant 0 : index
    %1 = vector.load %arg2[%c0_1, %c0_2] : memref<32x32xf32, #tpu.memory_space<vmem>>, vector<32x32xf32>
    %c0_3 = arith.constant 0 : index
    %c0_4 = arith.constant 0 : index
    %2 = vector.load %arg3[%c0_3, %c0_4] : memref<32x32xf32, #tpu.memory_space<vmem>>, vector<32x32xf32>
    %cst = arith.constant dense<0.000000e+00> : vector<32x64xf32>
    %3 = tpu.matmul %1, %0, %cst {dimension_numbers = #tpu.dot_dimension_numbers<[1], [0], [0], [1], [0, 0, 1, 1], [], []>} : vector<32x32xf32>, vector<32x64xf32>, vector<32x64xf32> -> vector<32x64xf32>
    %cst_5 = arith.constant dense<0.000000e+00> : vector<32x64xf32>
    %4 = tpu.matmul %2, %0, %cst_5 {dimension_numbers = #tpu.dot_dimension_numbers<[1], [0], [0], [1], [0, 0, 1, 1], [], []>} : vector<32x32xf32>, vector<32x64xf32>, vector<32x64xf32> -> vector<32x64xf32>
    %c0_6 = arith.constant 0 : index
    %c0_7 = arith.constant 0 : index
    %c0_8 = arith.constant 0 : index
    %5 = vector.load %arg4[%c0_6, %c0_7, %c0_8] : memref<3x64x64xf32, #tpu.memory_space<vmem>>, vector<1x64x64xf32>
    %6 = vector.shape_cast %5 : vector<1x64x64xf32> to vector<64x64xf32>
    %cst_9 = arith.constant dense<0.000000e+00> : vector<32x64xf32>
    %7 = tpu.matmul %3, %6, %cst_9 {dimension_numbers = #tpu.dot_dimension_numbers<[1], [0], [0], [1], [0, 0, 1, 1], [], []>} : vector<32x64xf32>, vector<64x64xf32>, vector<32x64xf32> -> vector<32x64xf32>
    %c1 = arith.constant 1 : index
    %c0_10 = arith.constant 0 : index
    %c0_11 = arith.constant 0 : index
    %8 = vector.load %arg4[%c1, %c0_10, %c0_11] : memref<3x64x64xf32, #tpu.memory_space<vmem>>, vector<1x64x64xf32>
    %9 = vector.shape_cast %8 : vector<1x64x64xf32> to vector<64x64xf32>
    %cst_12 = arith.constant dense<0.000000e+00> : vector<32x64xf32>
    %10 = tpu.matmul %0, %9, %cst_12 {dimension_numbers = #tpu.dot_dimension_numbers<[1], [0], [0], [1], [0, 0, 1, 1], [], []>} : vector<32x64xf32>, vector<64x64xf32>, vector<32x64xf32> -> vector<32x64xf32>
    %11 = arith.addf %7, %10 : vector<32x64xf32>
    %c2 = arith.constant 2 : index
    %c0_13 = arith.constant 0 : index
    %c0_14 = arith.constant 0 : index
    %12 = vector.load %arg4[%c2, %c0_13, %c0_14] : memref<3x64x64xf32, #tpu.memory_space<vmem>>, vector<1x64x64xf32>
    %13 = vector.shape_cast %12 : vector<1x64x64xf32> to vector<64x64xf32>
    %cst_15 = arith.constant dense<0.000000e+00> : vector<32x64xf32>
    %14 = tpu.matmul %4, %13, %cst_15 {dimension_numbers = #tpu.dot_dimension_numbers<[1], [0], [0], [1], [0, 0, 1, 1], [], []>} : vector<32x64xf32>, vector<64x64xf32>, vector<32x64xf32> -> vector<32x64xf32>
    %15 = arith.addf %11, %14 : vector<32x64xf32>
    %c0_16 = arith.constant 0 : index
    %c0_17 = arith.constant 0 : index
    %16 = vector.load %arg5[%c0_16, %c0_17] : memref<1x64xf32, #tpu.memory_space<vmem>>, vector<1x64xf32>
    %17 = vector.broadcast %16 : vector<1x64xf32> to vector<32x64xf32>
    %18 = arith.mulf %15, %17 : vector<32x64xf32>
    %c0_18 = arith.constant 0 : index
    %c0_19 = arith.constant 0 : index
    %19 = vector.load %arg6[%c0_18, %c0_19] : memref<1x64xf32, #tpu.memory_space<vmem>>, vector<1x64xf32>
    %20 = vector.broadcast %19 : vector<1x64xf32> to vector<32x64xf32>
    %21 = arith.addf %18, %20 : vector<32x64xf32>
    %cst_20 = arith.constant 0.000000e+00 : f32
    %22 = vector.broadcast %cst_20 : f32 to vector<32x64xf32>
    %23 = arith.maximumf %21, %22 : vector<32x64xf32>
    %cst_21 = arith.constant dense<0.000000e+00> : vector<32x64xf32>
    %24 = tpu.matmul %1, %23, %cst_21 {dimension_numbers = #tpu.dot_dimension_numbers<[1], [0], [0], [1], [0, 0, 1, 1], [], []>} : vector<32x32xf32>, vector<32x64xf32>, vector<32x64xf32> -> vector<32x64xf32>
    %cst_22 = arith.constant dense<0.000000e+00> : vector<32x64xf32>
    %25 = tpu.matmul %2, %23, %cst_22 {dimension_numbers = #tpu.dot_dimension_numbers<[1], [0], [0], [1], [0, 0, 1, 1], [], []>} : vector<32x32xf32>, vector<32x64xf32>, vector<32x64xf32> -> vector<32x64xf32>
    %c0_23 = arith.constant 0 : index
    %c0_24 = arith.constant 0 : index
    %c0_25 = arith.constant 0 : index
    %26 = vector.load %arg7[%c0_23, %c0_24, %c0_25] : memref<3x64x256xf32, #tpu.memory_space<vmem>>, vector<1x64x256xf32>
    %27 = vector.shape_cast %26 : vector<1x64x256xf32> to vector<64x256xf32>
    %cst_26 = arith.constant dense<0.000000e+00> : vector<32x256xf32>
    %28 = tpu.matmul %24, %27, %cst_26 {dimension_numbers = #tpu.dot_dimension_numbers<[1], [0], [0], [1], [0, 0, 1, 1], [], []>} : vector<32x64xf32>, vector<64x256xf32>, vector<32x256xf32> -> vector<32x256xf32>
    %c1_27 = arith.constant 1 : index
    %c0_28 = arith.constant 0 : index
    %c0_29 = arith.constant 0 : index
    %29 = vector.load %arg7[%c1_27, %c0_28, %c0_29] : memref<3x64x256xf32, #tpu.memory_space<vmem>>, vector<1x64x256xf32>
    %30 = vector.shape_cast %29 : vector<1x64x256xf32> to vector<64x256xf32>
    %cst_30 = arith.constant dense<0.000000e+00> : vector<32x256xf32>
    %31 = tpu.matmul %23, %30, %cst_30 {dimension_numbers = #tpu.dot_dimension_numbers<[1], [0], [0], [1], [0, 0, 1, 1], [], []>} : vector<32x64xf32>, vector<64x256xf32>, vector<32x256xf32> -> vector<32x256xf32>
    %32 = arith.addf %28, %31 : vector<32x256xf32>
    %c2_31 = arith.constant 2 : index
    %c0_32 = arith.constant 0 : index
    %c0_33 = arith.constant 0 : index
    %33 = vector.load %arg7[%c2_31, %c0_32, %c0_33] : memref<3x64x256xf32, #tpu.memory_space<vmem>>, vector<1x64x256xf32>
    %34 = vector.shape_cast %33 : vector<1x64x256xf32> to vector<64x256xf32>
    %cst_34 = arith.constant dense<0.000000e+00> : vector<32x256xf32>
    %35 = tpu.matmul %25, %34, %cst_34 {dimension_numbers = #tpu.dot_dimension_numbers<[1], [0], [0], [1], [0, 0, 1, 1], [], []>} : vector<32x64xf32>, vector<64x256xf32>, vector<32x256xf32> -> vector<32x256xf32>
    %36 = arith.addf %32, %35 : vector<32x256xf32>
    %c0_35 = arith.constant 0 : index
    %c0_36 = arith.constant 0 : index
    %37 = vector.load %arg8[%c0_35, %c0_36] : memref<1x256xf32, #tpu.memory_space<vmem>>, vector<1x256xf32>
    %38 = vector.broadcast %37 : vector<1x256xf32> to vector<32x256xf32>
    %39 = arith.mulf %36, %38 : vector<32x256xf32>
    %c0_37 = arith.constant 0 : index
    %c0_38 = arith.constant 0 : index
    %40 = vector.load %arg9[%c0_37, %c0_38] : memref<1x256xf32, #tpu.memory_space<vmem>>, vector<1x256xf32>
    %41 = vector.broadcast %40 : vector<1x256xf32> to vector<32x256xf32>
    %42 = arith.addf %39, %41 : vector<32x256xf32>
    %c0_39 = arith.constant 0 : index
    %c0_40 = arith.constant 0 : index
    %43 = vector.load %arg10[%c0_39, %c0_40] : memref<64x256xf32, #tpu.memory_space<vmem>>, vector<64x256xf32>
    %cst_41 = arith.constant dense<0.000000e+00> : vector<32x256xf32>
    %44 = tpu.matmul %0, %43, %cst_41 {dimension_numbers = #tpu.dot_dimension_numbers<[1], [0], [0], [1], [0, 0, 1, 1], [], []>} : vector<32x64xf32>, vector<64x256xf32>, vector<32x256xf32> -> vector<32x256xf32>
    %c0_42 = arith.constant 0 : index
    %c0_43 = arith.constant 0 : index
    %45 = vector.load %arg11[%c0_42, %c0_43] : memref<1x256xf32, #tpu.memory_space<vmem>>, vector<1x256xf32>
    %46 = vector.broadcast %45 : vector<1x256xf32> to vector<32x256xf32>
    %47 = arith.addf %44, %46 : vector<32x256xf32>
    %48 = arith.addf %42, %47 : vector<32x256xf32>
    %cst_44 = arith.constant 0.000000e+00 : f32
    %49 = vector.broadcast %cst_44 : f32 to vector<32x256xf32>
    %50 = arith.maximumf %48, %49 : vector<32x256xf32>
    %c0_45 = arith.constant 0 : index
    %c0_46 = arith.constant 0 : index
    %51 = vector.load %arg12[%c0_45, %c0_46] : memref<32x256xf32, #tpu.memory_space<vmem>>, vector<32x256xf32>
    tpu.vector_store %arg12[%c0_45, %c0_46], %50 {strides = array<i32>} : memref<32x256xf32, #tpu.memory_space<vmem>>, vector<32x256xf32>,
    return
  }
  func.func @transform_0(%arg0: i32) -> (i32, i32) {
    %c0_i32 = arith.constant 0 : i32
    %c0_i32_0 = arith.constant 0 : i32
    return %arg0, %c0_i32 : i32, i32
  }
  func.func @transform_1(%arg0: i32) -> (i32, i32) {
    %c0_i32 = arith.constant 0 : i32
    %c0_i32_0 = arith.constant 0 : i32
    %c0_i32_1 = arith.constant 0 : i32
    return %c0_i32, %c0_i32_0 : i32, i32
  }
  func.func @transform_2(%arg0: i32) -> (i32, i32) {
    %c0_i32 = arith.constant 0 : i32
    %c0_i32_0 = arith.constant 0 : i32
    %c0_i32_1 = arith.constant 0 : i32
    return %c0_i32, %c0_i32_0 : i32, i32
  }
  func.func @transform_3(%arg0: i32) -> (i32, i32, i32) {
    %c0_i32 = arith.constant 0 : i32
    %c0_i32_0 = arith.constant 0 : i32
    %c0_i32_1 = arith.constant 0 : i32
    %c0_i32_2 = arith.constant 0 : i32
    return %c0_i32, %c0_i32_0, %c0_i32_1 : i32, i32, i32
  }
  func.func @transform_4(%arg0: i32) -> (i32, i32) {
    %c0_i32 = arith.constant 0 : i32
    %c0_i32_0 = arith.constant 0 : i32
    %c0_i32_1 = arith.constant 0 : i32
    return %c0_i32, %c0_i32_0 : i32, i32
  }
  func.func @transform_5(%arg0: i32) -> (i32, i32) {
    %c0_i32 = arith.constant 0 : i32
    %c0_i32_0 = arith.constant 0 : i32
    %c0_i32_1 = arith.constant 0 : i32
    return %c0_i32, %c0_i32_0 : i32, i32
  }
  func.func @transform_6(%arg0: i32) -> (i32, i32, i32) {
    %c0_i32 = arith.constant 0 : i32
    %c0_i32_0 = arith.constant 0 : i32
    %c0_i32_1 = arith.constant 0 : i32
    %c0_i32_2 = arith.constant 0 : i32
    return %c0_i32, %c0_i32_0, %c0_i32_1 : i32, i32, i32
  }
  func.func @transform_7(%arg0: i32) -> (i32, i32) {
    %c0_i32 = arith.constant 0 : i32
    %c0_i32_0 = arith.constant 0 : i32
    %c0_i32_1 = arith.constant 0 : i32
    return %c0_i32, %c0_i32_0 : i32, i32
  }
  func.func @transform_8(%arg0: i32) -> (i32, i32) {
    %c0_i32 = arith.constant 0 : i32
    %c0_i32_0 = arith.constant 0 : i32
    %c0_i32_1 = arith.constant 0 : i32
    return %c0_i32, %c0_i32_0 : i32, i32
  }
  func.func @transform_9(%arg0: i32) -> (i32, i32) {
    %c0_i32 = arith.constant 0 : i32
    %c0_i32_0 = arith.constant 0 : i32
    %c0_i32_1 = arith.constant 0 : i32
    return %c0_i32, %c0_i32_0 : i32, i32
  }
  func.func @transform_10(%arg0: i32) -> (i32, i32) {
    %c0_i32 = arith.constant 0 : i32
    %c0_i32_0 = arith.constant 0 : i32
    %c0_i32_1 = arith.constant 0 : i32
    return %c0_i32, %c0_i32_0 : i32, i32
  }
  func.func @transform_11(%arg0: i32) -> (i32, i32) {
    %c0_i32 = arith.constant 0 : i32
    %c0_i32_0 = arith.constant 0 : i32
    return %arg0, %c0_i32 : i32, i32
  }
}

</mosaic_0001>

<bundles_post_ra>
// kernel: tpu_custom_call.1
= control target key start
LH: loop header
LB: loop body
LE: loop exit
PB: predicated region body
PF: predicated region fallthrough
CT: control target
= control target key end

     0   :  { %16 = vsyncpa [#allocation3], 0  ;;  %s2059_s0 = inlined_call_operand.hbm [shape: f32[32,64], index: 0, kind: input, shape index: {}]   ;;  %s2060_s1 = inlined_call_operand.hbm [shape: f32[32,32], index: 1, kind: input, shape index: {}]   ;;  %s2061_s2 = inlined_call_operand.hbm [shape: f32[32,32], index: 2, kind: input, shape index: {}]   ;;  %s2062_s3 = inlined_call_operand.hbm [shape: f32[3,64,64], index: 3, kind: input, shape index: {}]   ;;  %s2063_s4 = inlined_call_operand.vmem [shape: f32[1,64], index: 4, kind: input, shape index: {}]   ;;  %s2064_s5 = inlined_call_operand.vmem [shape: f32[1,64], index: 5, kind: input, shape index: {}]   ;;  %s2065_s6 = inlined_call_operand.hbm [shape: f32[3,64,256], index: 6, kind: input, shape index: {}]   ;;  %s2066_s7 = inlined_call_operand.vmem [shape: f32[1,256], index: 7, kind: input, shape index: {}]   ;;  %s2067_s8 = inlined_call_operand.vmem [shape: f32[1,256], index: 8, kind: input, shape index: {}]   ;;  %s2068_s9 = inlined_call_operand.hbm [shape: f32[64,256], index: 9, kind: input, shape index: {}]   ;;  %s2069_s10 = inlined_call_operand.vmem [shape: f32[1,256], index: 10, kind: input, shape index: {}]   ;;  %s2070_s11 = inlined_call_operand.hbm [shape: f32[32,256], index: 11, kind: output, shape index: {}]  }
   0x1   :  { %17 = vsyncpa [#allocation6], 0 }
   0x2   :  { %18 = vsyncpa [#allocation9], 0 }
   0x3   :  { %19 = vsyncpa [#allocation12], 0 }
   0x4   :  { %20 = vsyncpa [#allocation4], 0  ;;  %s1806_s17 = smov [#allocation5]   ;;  %s1807_s19 = smov [#allocation8]  }
   0x5   :  { %s38_s18 = sshll.u32 %s1806_s17, 4  ;;  %s62_s20 = sshll.u32 %s1807_s19, 4  ;;  %s39_s18 = int_to_ptr.vmem [resolvable:$true] %s38_s18  ;;  %s63_s20 = int_to_ptr.vmem [resolvable:$true] %s62_s20 }
   0x6   :  { %s1664_s21 = scalar_lea.vmem %s39_s18, 512  ;;  %p1669_p1 = scmp.lt.s32.totalorder %s39_s18, %s39_s18 }
   0x7   :  { %p1665_p0 = scmp.ne.s32.totalorder %s39_s18, %s1664_s21  ;;  %p1670_p2 = scmp.lt.s32.totalorder %s1664_s21, %s1664_s21 }
   0x9   :  { %p1671_p3 = por %p1670_p2, %p1669_p1 }
   0xb   :  { %p1672_p4 = pnand %p1671_p3, %p1665_p0 }
   0xd   :  { %1675 = shalt.err (!%p1672_p4)
}
   0xe   :  { %s1808_s22 = smov 128   ;;  %s1809_s23 = smov 8  }
   0xf   :  { %44 = dma.hbm_to_vmem [thread:$0]  %s2060_s1, 512, %s39_s18, [#allocation6], %s1808_s22, %s1808_s22, %s1809_s23  }
  0x10   :  { %s1684_s26 = scalar_lea.vmem %s63_s20, 3072  ;;  %p1689_p6 = scmp.lt.s32.totalorder %s63_s20, %s63_s20 }
  0x11   :  { %p1685_p5 = scmp.ne.s32.totalorder %s63_s20, %s1684_s26  ;;  %p1690_p7 = scmp.lt.s32.totalorder %s1684_s26, %s1684_s26 }
  0x13   :  { %p1691_p8 = por %p1690_p7, %p1689_p6 }
  0x15   :  { %p1692_p9 = pnand %p1691_p8, %p1685_p5 }
  0x17   :  { %1695 = shalt.err (!%p1692_p9)
}
  0x18   :  { %68 = dma.hbm_to_vmem [thread:$0]  %s2062_s3, 3072, %s63_s20, [#allocation9], %s1808_s22, %s1808_s22, %s1809_s23  }
  0x19   :  { %s1810_s29 = smov [#allocation2]   ;;  %s1811_s12 = smov [#allocation7]  }
  0x1a   :  { %s26_s30 = sshll.u32 %s1810_s29, 4  ;;  %s50_s13 = sshll.u32 %s1811_s12, 4  ;;  %s27_s30 = int_to_ptr.vmem [resolvable:$true] %s26_s30  ;;  %s51_s13 = int_to_ptr.vmem [resolvable:$true] %s50_s13 }
  0x1b   :  { %s1704_s1 = scalar_lea.vmem %s27_s30, 512  ;;  %p1709_p11 = scmp.lt.s32.totalorder %s27_s30, %s27_s30 }
  0x1c   :  { %p1705_p10 = scmp.ne.s32.totalorder %s27_s30, %s1704_s1  ;;  %p1710_p12 = scmp.lt.s32.totalorder %s1704_s1, %s1704_s1 }
  0x1e   :  { %p1711_p13 = por %p1710_p12, %p1709_p11 }
  0x20   :  { %p1712_p0 = pnand %p1711_p13, %p1705_p10 }
  0x22   :  { %1715 = shalt.err (!%p1712_p0)
}
  0x23   :  { %32 = dma.hbm_to_vmem [thread:$0]  %s2059_s0, 512, %s27_s30, [#allocation3], %s1808_s22, %s1808_s22, %s1809_s23  }
  0x24   :  { %s1724_s3 = scalar_lea.vmem %s51_s13, 512  ;;  %p1729_p2 = scmp.lt.s32.totalorder %s51_s13, %s51_s13 }
  0x25   :  { %p1725_p1 = scmp.ne.s32.totalorder %s51_s13, %s1724_s3  ;;  %p1730_p3 = scmp.lt.s32.totalorder %s1724_s3, %s1724_s3 }
  0x27   :  { %p1731_p4 = por %p1730_p3, %p1729_p2 }
  0x29   :  { %p1732_p5 = pnand %p1731_p4, %p1725_p1 }
  0x2b   :  { %1735 = shalt.err (!%p1732_p5)
}
  0x2c   :  { %56 = dma.hbm_to_vmem [thread:$0]  %s2061_s2, 512, %s51_s13, [#allocation6], %s1808_s22, %s1808_s22, %s1809_s23  }
  0x2d   :  { %s1812_s18 = smov [#allocation10]  }
  0x2e   :  { %s78_s19 = sshll.u32 %s1812_s18, 4  ;;  %s79_s19 = int_to_ptr.vmem [resolvable:$true] %s78_s19 }
  0x2f   :  { %s1744_s20 = scalar_lea.vmem %s79_s19, 6144  ;;  %p1749_p7 = scmp.lt.s32.totalorder %s79_s19, %s79_s19 }
  0x30   :  { %p1745_p6 = scmp.ne.s32.totalorder %s79_s19, %s1744_s20  ;;  %p1750_p8 = scmp.lt.s32.totalorder %s1744_s20, %s1744_s20 }
  0x32   :  { %p1751_p9 = por %p1750_p8, %p1749_p7 }
  0x34   :  { %p1752_p10 = pnand %p1751_p9, %p1745_p6 }
  0x36   :  { %1755 = shalt.err (!%p1752_p10)
}
  0x37   :  { %s1813_s0 = smov 256   ;;  %s1814_s21 = smov 16  }
  0x38   :  { %84 = dma.hbm_to_vmem [thread:$0]  %s2065_s6, 6144, %s79_s19, [#allocation9], %s1813_s0, %s1813_s0, %s1814_s21  }
  0x39   :  { %s1815_s2 = smov [#allocation11]  }
  0x3a   :  { %s94_s22 = sshll.u32 %s1815_s2, 4  ;;  %s95_s22 = int_to_ptr.vmem [resolvable:$true] %s94_s22 }
  0x3b   :  { %s1764_s23 = scalar_lea.vmem %s95_s22, 2048  ;;  %p1769_p12 = scmp.lt.s32.totalorder %s95_s22, %s95_s22 }
  0x3c   :  { %p1765_p11 = scmp.ne.s32.totalorder %s95_s22, %s1764_s23  ;;  %p1770_p13 = scmp.lt.s32.totalorder %s1764_s23, %s1764_s23 }
  0x3e   :  { %p1771_p0 = por %p1770_p13, %p1769_p12 }
  0x40   :  { %p1772_p1 = pnand %p1771_p0, %p1765_p11 }
  0x42   :  { %1775 = shalt.err (!%p1772_p1)
}
  0x43   :  { %100 = dma.hbm_to_vmem [thread:$0]  %s2068_s9, 2048, %s95_s22, [#allocation12], %s1813_s0, %s1813_s0, %s1814_s21  }
  0x44   :  { %1796 = dma.done.wait [#allocation3], 512  }
  0x45   :  { %1797 = vsyncadd [#allocation3], 4294966784 }
  0x46   :  { %1798 = dma.done.wait [#allocation6], 1024  }
  0x47   :  { %1799 = vsyncadd [#allocation6], 4294966272 }
  0x48   :  { %1800 = dma.done.wait [#allocation9], 9216  }
  0x49   :  { %1801 = vsyncadd [#allocation9], 4294958080 }
  0x4a   :  { %1802 = dma.done.wait [#allocation12], 2048  }
  0x4b   :  { %1803 = vsyncadd [#allocation12], 4294965248  ;;  %v1914_v0 = vld [vmem:[#allocation2 + $0x18] sm:$0xff]  ;;  %v1916_v1 = vld [vmem:[#allocation2 + $0x10] sm:$0xff]  ;;  %vm133_vm0 = vcmask 261120   ;;  %vm345_vm1 = vcmask 523264  }
  0x4c   :  { %1522 = vmatprep.subr.mxu0 %v1914_v0  ;;  %1536 = vmatprep.subr.mxu1 %v1914_v0  ;;  %v1922_v2 = vld [vmem:[#allocation2 + $0x8] sm:$0xff]  ;;  %v1928_v3 = vld [vmem:[#allocation2] sm:$0xff]  ;;  %v1947_v8 = vld [vmem:[#allocation5 + $0x10] sm:$0xff]  ;;  %v1816_v60 = vmov 0.0  }
  0x4d   :  { %1523 = vmatpush3.msra.mxu0 %v1914_v0  ;;  %1537 = vmatpush3.msra.mxu1 %v1914_v0  ;;  %v1932_v4 = vld [vmem:[#allocation5] sm:$0xff]  ;;  %v1940_v6 = vld [vmem:[#allocation5 + $0x8] sm:$0xff]  ;;  %v1949_v9 = vld [vmem:[#allocation7 + $0x10] sm:$0xff] }
  0x4e   :  { %1524 = vmatprep.subr.mxu0 %v1916_v1  ;;  %1538 = vmatprep.subr.mxu1 %v1916_v1  ;;  %v1936_v5 = vld [vmem:[#allocation7] sm:$0xff]  ;;  %v1942_v7 = vld [vmem:[#allocation7 + $0x8] sm:$0xff]  ;;  %v344_v10 = vld [vmem:[#allocation8 + $0x78] sm:$0xff] }
  0x4f   :  { %1525 = vmatpush3.msra.mxu0 %v1916_v1  ;;  %1539 = vmatpush3.msra.mxu1 %v1916_v1  ;;  %v335_v11 = vld [vmem:[#allocation8 + $0x38] sm:$0xff]  ;;  %v343_v14 = vld [vmem:[#allocation8 + $0x70] sm:$0xff]  ;;  %v342_v16 = vld [vmem:[#allocation8 + $0x68] sm:$0xff] }
  0x50   :  { %1526 = vmatprep.subr.mxu0 %v1922_v2  ;;  %1540 = vmatprep.subr.mxu1 %v1922_v2  ;;  %v1962_v12 = vld [vmem:[#allocation5 + $0x18] sm:$0xff]  ;;  %v334_v15 = vld [vmem:[#allocation8 + $0x30] sm:$0xff]  ;;  %v333_v17 = vld [vmem:[#allocation8 + $0x28] sm:$0xff] }
  0x51   :  { %1527 = vmatpush3.msra.mxu0 %v1922_v2  ;;  %1541 = vmatpush3.msra.mxu1 %v1922_v2  ;;  %v1964_v13 = vld [vmem:[#allocation7 + $0x18] sm:$0xff]  ;;  %v341_v18 = vld [vmem:[#allocation8 + $0x60] sm:$0xff]  ;;  %v339_v22 = vld [vmem:[#allocation8 + $0x50] sm:$0xff] }
  0x52   :  { %1528 = vmatprep.subr.mxu0 %v1928_v3  ;;  %1542 = vmatprep.subr.mxu1 %v1928_v3  ;;  %v332_v19 = vld [vmem:[#allocation8 + $0x20] sm:$0xff]  ;;  %v340_v20 = vld [vmem:[#allocation8 + $0x58] sm:$0xff]  ;;  %v330_v23 = vld [vmem:[#allocation8 + $0x10] sm:$0xff] }
  0x53   :  { %1529 = vmatpush3.msra.mxu0 %v1928_v3  ;;  %1530 = vmatprep.mubr.msk.f32.mxu0 %vm133_vm0, %v1932_v4  ;;  %v331_v21 = vld [vmem:[#allocation8 + $0x18] sm:$0xff]  ;;  %v338_v24 = vld [vmem:[#allocation8 + $0x48] sm:$0xff]  ;;  %v337_v25 = vld [vmem:[#allocation8 + $0x40] sm:$0xff] }
  0x54   :  { %1543 = vmatpush3.msra.mxu1 %v1928_v3  ;;  %1544 = vmatprep.mubr.msk.f32.mxu1 %vm133_vm0, %v1936_v5  ;;  %v548_v26 = vld [vmem:[#allocation8 + $0xb8] sm:$0xff]  ;;  %v547_v27 = vld [vmem:[#allocation8 + $0xb0] sm:$0xff]  ;;  %v546_v28 = vld [vmem:[#allocation8 + $0xa8] sm:$0xff] }
  0x55   :  { %1531 = vmatmul.mubr.msk.f32.vlgmr.msra.gmra.mxu0 %vm133_vm0, %v1940_v6  ;;  %1545 = vmatmul.mubr.msk.f32.vlgmr.msra.gmra.mxu1 %vm133_vm0, %v1942_v7  ;;  %v545_v29 = vld [vmem:[#allocation8 + $0xa0] sm:$0xff]  ;;  %v544_v30 = vld [vmem:[#allocation8 + $0x98] sm:$0xff]  ;;  %v543_v31 = vld [vmem:[#allocation8 + $0x90] sm:$0xff] }
  0x56   :  { %1533 = vmatprep.mubr.msk.f32.mxu0 %vm133_vm0, %v1947_v8  ;;  %1547 = vmatprep.mubr.msk.f32.mxu1 %vm133_vm0, %v1949_v9  ;;  %v329_v32 = vld [vmem:[#allocation8 + $0x8] sm:$0xff]  ;;  %v328_v34 = vld [vmem:[#allocation8] sm:$0xff]  ;;  %v878_v36 = vld [vmem:[#allocation10 + $0xf8] sm:$0xff] }
  0x57   :  { %1550 = vmatprep.subr.mxu0 %v344_v10  ;;  %1572 = vmatprep.subr.mxu1 %v335_v11  ;;  %v542_v33 = vld [vmem:[#allocation8 + $0x88] sm:$0xff]  ;;  %v541_v35 = vld [vmem:[#allocation8 + $0x80] sm:$0xff]  ;;  %v877_v41 = vld [vmem:[#allocation10 + $0xf0] sm:$0xff] }
  0x58   :  { %1551 = vmatpush3.msra.mxu0 %v344_v10  ;;  %1573 = vmatpush3.msra.mxu1 %v335_v11  ;;  %v876_v42 = vld [vmem:[#allocation10 + $0xe8] sm:$0xff]  ;;  %v875_v47 = vld [vmem:[#allocation10 + $0xe0] sm:$0xff]  ;;  %v874_v48 = vld [vmem:[#allocation10 + $0xd8] sm:$0xff] }
  0x59   :  { %1534 = vmatmul.mubr.msk.f32.gmra.mxu0 %vm133_vm0, %v1962_v12  ;;  %1548 = vmatmul.mubr.msk.f32.gmra.mxu1 %vm133_vm0, %v1964_v13  ;;  %v873_v49 = vld [vmem:[#allocation10 + $0xd0] sm:$0xff]  ;;  %v872_v50 = vld [vmem:[#allocation10 + $0xc8] sm:$0xff]  ;;  %v871_v51 = vld [vmem:[#allocation10 + $0xc0] sm:$0xff] }
  0x5a   :  { %1552 = vmatprep.subr.mxu0 %v343_v14  ;;  %1566 = vmatprep.mubr.msk.f32.mxu0 %vm345_vm1, %v1928_v3  ;;  %v870_v52 = vld [vmem:[#allocation10 + $0xb8] sm:$0xff]  ;;  %v869_v53 = vld [vmem:[#allocation10 + $0xb0] sm:$0xff]  ;;  %v868_v54 = vld [vmem:[#allocation10 + $0xa8] sm:$0xff] }
  0x5b   :  { %1553 = vmatpush3.msra.mxu0 %v343_v14  ;;  %1574 = vmatprep.subr.mxu1 %v334_v15  ;;  %v867_v55 = vld [vmem:[#allocation10 + $0xa0] sm:$0xff]  ;;  %v866_v56 = vld [vmem:[#allocation10 + $0x98] sm:$0xff]  ;;  %v865_v57 = vld [vmem:[#allocation10 + $0x90] sm:$0xff] }
  0x5c   :  { %1554 = vmatprep.subr.mxu0 %v342_v16  ;;  %1575 = vmatpush3.msra.mxu1 %v334_v15  ;;  %v864_v58 = vld [vmem:[#allocation10 + $0x88] sm:$0xff]  ;;  %v863_v59 = vld [vmem:[#allocation10 + $0x80] sm:$0xff] }
  0x5d   :  { %1555 = vmatpush3.msra.mxu0 %v342_v16  ;;  %1576 = vmatprep.subr.mxu1 %v333_v17 }
  0x5e   :  { %1556 = vmatprep.subr.mxu0 %v341_v18  ;;  %1577 = vmatpush3.msra.mxu1 %v333_v17 }
  0x5f   :  { %1557 = vmatpush3.msra.mxu0 %v341_v18  ;;  %1578 = vmatprep.subr.mxu1 %v332_v19 }
  0x60   :  { %1558 = vmatprep.subr.mxu0 %v340_v20  ;;  %1579 = vmatpush3.msra.mxu1 %v332_v19  ;;  %v1428_v19 = vld [vmem:[%s2063_s4] ss:$0 sm:$0xff] }
  0x61   :  { %1559 = vmatpush3.msra.mxu0 %v340_v20  ;;  %1580 = vmatprep.subr.mxu1 %v331_v21 }
  0x62   :  { %1560 = vmatprep.subr.mxu0 %v339_v22  ;;  %1581 = vmatpush3.msra.mxu1 %v331_v21 }
  0x63   :  { %1561 = vmatpush3.msra.mxu0 %v339_v22  ;;  %1582 = vmatprep.subr.mxu1 %v330_v23 }
  0x64   :  { %1562 = vmatprep.subr.mxu0 %v338_v24  ;;  %1583 = vmatpush3.msra.mxu1 %v330_v23 }
  0x65   :  { %1563 = vmatpush3.msra.mxu0 %v338_v24  ;;  %1584 = vmatprep.subr.mxu1 %v329_v32 }
  0x66   :  { %1564 = vmatprep.subr.mxu0 %v337_v25  ;;  %1585 = vmatpush3.msra.mxu1 %v329_v32 }
  0x67   :  { %1565 = vmatpush3.msra.mxu0 %v337_v25  ;;  %1586 = vmatprep.subr.mxu1 %v328_v34 }
  0x68   :  { %1594 = vmatprep.subr.mxu0 %v548_v26  ;;  %1567 = vmatmul.mubr.msk.f32.vlgmr.msra.gmra.mxu0 %vm345_vm1, %v1922_v2 }
  0x69   :  { %1595 = vmatpush3.msra.mxu0 %v548_v26  ;;  %1569 = vmatprep.mubr.msk.f32.mxu0 %vm345_vm1, %v1916_v1 }
  0x6a   :  { %1596 = vmatprep.subr.mxu0 %v547_v27  ;;  %1587 = vmatpush3.msra.mxu1 %v328_v34 }
  0x6b   :  { %1597 = vmatpush3.msra.mxu0 %v547_v27 }
  0x6c   :  { %1598 = vmatprep.subr.mxu0 %v546_v28  ;;  %1570 = vmatmul.mubr.msk.f32.gmra.mxu0 %vm345_vm1, %v1914_v0 }
  0x6d   :  { %1599 = vmatpush3.msra.mxu0 %v546_v28 }
  0x6e   :  { %1600 = vmatprep.subr.mxu0 %v545_v29 }
  0x6f   :  { %1601 = vmatpush3.msra.mxu0 %v545_v29  ;;  %v1429_v29 = vld [vmem:[%s2064_s5] ss:$0 sm:$0xff] }
  0x70   :  { %1602 = vmatprep.subr.mxu0 %v544_v30 }
  0x71   :  { %1603 = vmatpush3.msra.mxu0 %v544_v30 }
  0x72   :  { %1604 = vmatprep.subr.mxu0 %v543_v31 }
  0x73   :  { %1605 = vmatpush3.msra.mxu0 %v543_v31 }
  0x74   :  { %1606 = vmatprep.subr.mxu0 %v542_v33 }
  0x75   :  { %1607 = vmatpush3.msra.mxu0 %v542_v33 }
  0x76   :  { %1608 = vmatprep.subr.mxu0 %v541_v35 }
  0x77   :  { %1609 = vmatpush3.msra.mxu0 %v541_v35 }
  0x78   :  { %907 = vmatprep.subr.mxu0 %v878_v36 }
 0x115   :  { %v1532_v37 = vpop.f32.mrf.mxu0  ;;  %v1546_v38 = vpop.f32.mrf.mxu1 }
 0x117   :  { %v212_v39 = vpop.f32.mrf.mxu0  ;;  %v309_v40 = vpop.f32.mrf.mxu1 }
 0x118   :  { %1588 = vmatprep.mubr.msk.f32.mxu1 %vm345_vm1, %v212_v39  ;;  %1610 = vmatprep.mubr.msk.f32.mxu0 %vm345_vm1, %v309_v40 }
 0x119   :  { %v1535_v43 = vpop.f32.mrf.mxu0  ;;  %v1549_v44 = vpop.f32.mrf.mxu1  ;;  %1589 = vmatmul.mubr.msk.f32.vlgmr.msra.gmra.mxu1 %vm345_vm1, %v1532_v37  ;;  %1611 = vmatmul.mubr.msk.f32.vlgmr.msra.gmra.mxu0 %vm345_vm1, %v1546_v38 }
 0x11a   :  { %908 = vmatpush1.msra.mxu0 %v877_v41 }
 0x11b   :  { %v222_v45 = vpop.f32.mrf.mxu0  ;;  %v319_v46 = vpop.f32.mrf.mxu1  ;;  %909 = vmatprep.subr.mxu0 %v876_v42  ;;  %v860_v42 = vld [vmem:[#allocation10 + $0x70] sm:$0xff] }
 0x11c   :  { %1591 = vmatprep.mubr.msk.f32.mxu1 %vm345_vm1, %v222_v45  ;;  %1613 = vmatprep.mubr.msk.f32.mxu0 %vm345_vm1, %v319_v46  ;;  %v853_v45 = vld [vmem:[#allocation10 + $0x38] sm:$0xff] }
 0x11d   :  { %1592 = vmatmul.mubr.msk.f32.gmra.mxu1 %vm345_vm1, %v1535_v43  ;;  %1614 = vmatmul.mubr.msk.f32.gmra.mxu0 %vm345_vm1, %v1549_v44  ;;  %v859_v43 = vld [vmem:[#allocation10 + $0x68] sm:$0xff]  ;;  %v1097_v46 = vld [vmem:[#allocation10 + $0x178] sm:$0xff] }
 0x11e   :  { %1624 = vmatprep.mubr.msk.f32.mxu1 %vm133_vm0, %v1932_v4  ;;  %910 = vmatpush1.msra.mxu0 %v875_v47  ;;  %v855_v44 = vld [vmem:[#allocation10 + $0x48] sm:$0xff]  ;;  %v1096_v47 = vld [vmem:[#allocation10 + $0x170] sm:$0xff] }
 0x11f   :  { %911 = vmatprep.subr.mxu0 %v874_v48  ;;  %955 = vmatprep.mubr.f32.mxu0 %v1816_v60  ;;  %v1095_v48 = vld [vmem:[#allocation10 + $0x168] sm:$0xff] }
 0x120   :  { %912 = vmatpush1.msra.mxu0 %v873_v49  ;;  %v850_v49 = vld [vmem:[#allocation10 + $0x20] sm:$0xff] }
 0x121   :  { %913 = vmatprep.subr.mxu0 %v872_v50  ;;  %v1094_v50 = vld [vmem:[#allocation10 + $0x160] sm:$0xff] }
 0x122   :  { %914 = vmatpush1.msra.mxu0 %v871_v51  ;;  %v849_v51 = vld [vmem:[#allocation10 + $0x18] sm:$0xff] }
 0x123   :  { %915 = vmatprep.subr.mxu0 %v870_v52  ;;  %v1093_v52 = vld [vmem:[#allocation10 + $0x158] sm:$0xff] }
 0x124   :  { %916 = vmatpush1.msra.mxu0 %v869_v53  ;;  %v848_v53 = vld [vmem:[#allocation10 + $0x10] sm:$0xff] }
 0x125   :  { %917 = vmatprep.subr.mxu0 %v868_v54  ;;  %v1092_v54 = vld [vmem:[#allocation10 + $0x150] sm:$0xff] }
 0x126   :  { %918 = vmatpush1.msra.mxu0 %v867_v55  ;;  %v847_v55 = vld [vmem:[#allocation10 + $0x8] sm:$0xff] }
 0x127   :  { %919 = vmatprep.subr.mxu0 %v866_v56  ;;  %v1091_v56 = vld [vmem:[#allocation10 + $0x148] sm:$0xff] }
 0x128   :  { %920 = vmatpush1.msra.mxu0 %v865_v57  ;;  %v1568_v61 = vpop.f32.mrf.mxu0  ;;  %v846_v57 = vld [vmem:[#allocation10] sm:$0xff] }
 0x129   :  { %921 = vmatprep.subr.mxu0 %v864_v58  ;;  %v1090_v58 = vld [vmem:[#allocation10 + $0x140] sm:$0xff] }
 0x12a   :  { %922 = vmatpush1.msra.mxu0 %v863_v59  ;;  %v424_v62 = vpop.f32.mrf.mxu0  ;;  %v1089_v59 = vld [vmem:[#allocation10 + $0x138] sm:$0xff] }
 0x12b   :  { %1126 = vmatprep.subr.mxu0 %v1097_v46 }
 0x12c   :  { %v1571_v63 = vpop.f32.mrf.mxu0 }
 0x12e   :  { %v434_v4 = vpop.f32.mrf.mxu0 }
 0x1d9   :  { %v1590_v10 = vpop.f32.mrf.mxu1  ;;  %v1612_v11 = vpop.f32.mrf.mxu0 }
 0x1da   :  { %v527_v14 = vadd.f32 %v1590_v10, %v1568_v61  ;;  %v1262_v61 = vld [vmem:[#allocation11 + $0x78] sm:$0xff] }
 0x1db   :  { %v521_v15 = vpop.f32.mrf.mxu1  ;;  %v627_v16 = vpop.f32.mrf.mxu0  ;;  %v1085_v10 = vld [vmem:[#allocation10 + $0x118] sm:$0xff] }
 0x1dc   :  { %v647_v17 = vadd.f32 %v1612_v11, %v527_v14  ;;  %v522_v18 = vadd.f32 %v521_v15, %v424_v62  ;;  %v1088_v62 = vld [vmem:[#allocation10 + $0x130] sm:$0xff]  ;;  %v1083_v14 = vld [vmem:[#allocation10 + $0x108] sm:$0xff]  ;;  %v1082_v15 = vld [vmem:[#allocation10 + $0x100] sm:$0xff] }
 0x1dd   :  { %v1593_v20 = vpop.f32.mrf.mxu1  ;;  %v1615_v21 = vpop.f32.mrf.mxu0  ;;  %v1084_v11 = vld [vmem:[#allocation10 + $0x110] sm:$0xff] }
 0x1de   :  { %v646_v22 = vadd.f32 %v627_v16, %v522_v18  ;;  %v537_v23 = vadd.f32 %v1593_v20, %v1571_v63  ;;  %v658_v25 = vmul.f32 %v1428_v19, %v647_v17  ;;  %v1087_v63 = vld [vmem:[#allocation10 + $0x128] sm:$0xff]  ;;  %v1261_v17 = vld [vmem:[#allocation11 + $0x70] sm:$0xff]  ;;  %v1259_v20 = vld [vmem:[#allocation11 + $0x60] sm:$0xff] }
 0x1df   :  { %v531_v24 = vpop.f32.mrf.mxu1  ;;  %v637_v30 = vpop.f32.mrf.mxu0 }
 0x1e0   :  { %v657_v26 = vmul.f32 %v1428_v19, %v646_v22  ;;  %v649_v27 = vadd.f32 %v1615_v21, %v537_v23  ;;  %v532_v28 = vadd.f32 %v531_v24, %v434_v4  ;;  %v669_v34 = vadd.f32 %v1429_v29, %v658_v25  ;;  %v1086_v4 = vld [vmem:[#allocation10 + $0x120] sm:$0xff]  ;;  %v1258_v22 = vld [vmem:[#allocation11 + $0x58] sm:$0xff]  ;;  %v1257_v23 = vld [vmem:[#allocation11 + $0x50] sm:$0xff] }
 0x1e1   :  { %v1256_v25 = vld [vmem:[#allocation11 + $0x48] sm:$0xff] }
 0x1e2   :  { %v668_v31 = vadd.f32 %v1429_v29, %v657_v26  ;;  %v660_v32 = vmul.f32 %v1428_v19, %v649_v27  ;;  %v648_v33 = vadd.f32 %v637_v30, %v532_v28  ;;  %v673_v40 = vmax.f32 %v669_v34, 0.0  ;;  %v1255_v26 = vld [vmem:[#allocation11 + $0x40] sm:$0xff]  ;;  %v1254_v28 = vld [vmem:[#allocation11 + $0x38] sm:$0xff]  ;;  %v1253_v30 = vld [vmem:[#allocation11 + $0x30] sm:$0xff] }
 0x1e3   :  { %v1250_v34 = vld [vmem:[#allocation11 + $0x18] sm:$0xff] }
 0x1e4   :  { %v672_v35 = vmax.f32 %v668_v31, 0.0  ;;  %v671_v36 = vadd.f32 %v1429_v29, %v660_v32  ;;  %v659_v37 = vmul.f32 %v1428_v19, %v648_v33  ;;  %v1260_v19 = vld [vmem:[#allocation11 + $0x68] sm:$0xff]  ;;  %v1251_v32 = vld [vmem:[#allocation11 + $0x20] sm:$0xff] }
 0x1e5   :  { %v1252_v31 = vld [vmem:[#allocation11 + $0x28] sm:$0xff] }
 0x1e6   :  { %v675_v38 = vmax.f32 %v671_v36, 0.0  ;;  %v670_v39 = vadd.f32 %v1429_v29, %v659_v37  ;;  %1438 = vmatmul.mubr.msk.f32.vlgmr.msra.gmra.mxu0 %vm345_vm1, %v672_v35  ;;  %v1248_v36 = vld [vmem:[#allocation11 + $0x8] sm:$0xff] }
 0x1e7   :  { %961 = vmatprep.mubr.f32.mxu0 %v1816_v60  ;;  %1127 = vmatpush1.msra.mxu0 %v1096_v47 }
 0x1e8   :  { %v674_v41 = vmax.f32 %v670_v39, 0.0  ;;  %1616 = vmatprep.subr.mxu1 %v675_v38  ;;  %1128 = vmatprep.subr.mxu0 %v1095_v48 }
 0x1e9   :  { %1617 = vmatpush3.msra.mxu1 %v675_v38  ;;  %1129 = vmatpush1.msra.mxu0 %v1094_v50 }
 0x1ea   :  { %1618 = vmatprep.subr.mxu1 %v674_v41  ;;  %1439 = vmatmul.mubr.msk.f32.gmra.mxu0 %vm345_vm1, %v673_v40 }
 0x1eb   :  { %1619 = vmatpush3.msra.mxu1 %v674_v41  ;;  %967 = vmatprep.mubr.f32.mxu0 %v1816_v60 }
 0x1ec   :  { %1620 = vmatprep.subr.mxu1 %v673_v40  ;;  %1130 = vmatprep.subr.mxu0 %v1093_v52 }
 0x1ed   :  { %1621 = vmatpush3.msra.mxu1 %v673_v40  ;;  %1131 = vmatpush1.msra.mxu0 %v1092_v54  ;;  %v1263_v54 = vld [vmem:[%s2069_s10] sm:$0x3] }
 0x1ee   :  { %1622 = vmatprep.subr.mxu1 %v672_v35  ;;  %1440 = vmatmul.mubr.msk.f32.gmra.mxu0 %vm345_vm1, %v674_v41 }
 0x1ef   :  { %1623 = vmatpush3.msra.mxu1 %v672_v35  ;;  %973 = vmatprep.mubr.f32.mxu0 %v1816_v60 }
 0x1f0   :  { %1625 = vmatmul.mubr.msk.f32.vlgmr.msra.gmra.mxu1 %vm133_vm0, %v1940_v6  ;;  %1630 = vmatprep.subr.mxu1 %v675_v38  ;;  %v861_v6 = vld [vmem:[#allocation10 + $0x78] sm:$0xff] }
 0x1f1   :  { %1631 = vmatpush3.msra.mxu1 %v675_v38  ;;  %1627 = vmatprep.mubr.msk.f32.mxu1 %vm133_vm0, %v1947_v8  ;;  %v857_v8 = vld [vmem:[#allocation10 + $0x58] sm:$0xff] }
 0x1f2   :  { %1632 = vmatprep.subr.mxu1 %v674_v41  ;;  %1441 = vmatmul.mubr.msk.f32.gmra.mxu0 %vm345_vm1, %v675_v38  ;;  %v1247_v38 = vld [vmem:[#allocation11] sm:$0xff] }
 0x1f3   :  { %1633 = vmatpush3.msra.mxu1 %v674_v41  ;;  %1174 = vmatprep.mubr.f32.mxu0 %v1816_v60 }
 0x1f4   :  { %1628 = vmatmul.mubr.msk.f32.gmra.mxu1 %vm133_vm0, %v1962_v12  ;;  %1634 = vmatprep.subr.mxu1 %v673_v40  ;;  %v856_v12 = vld [vmem:[#allocation10 + $0x50] sm:$0xff] }
 0x1f5   :  { %1635 = vmatpush3.msra.mxu1 %v673_v40  ;;  %1638 = vmatprep.mubr.msk.f32.mxu1 %vm133_vm0, %v1936_v5  ;;  %v858_v5 = vld [vmem:[#allocation10 + $0x60] sm:$0xff] }
 0x1f6   :  { %1636 = vmatprep.subr.mxu1 %v672_v35  ;;  %1132 = vmatprep.subr.mxu0 %v1091_v56 }
 0x1f7   :  { %1637 = vmatpush3.msra.mxu1 %v672_v35  ;;  %1133 = vmatpush1.msra.mxu0 %v1090_v58  ;;  %v1249_v35 = vld [vmem:[#allocation11 + $0x10] sm:$0xff] }
 0x1f8   :  { %1639 = vmatmul.mubr.msk.f32.vlgmr.msra.gmra.mxu1 %vm133_vm0, %v1942_v7  ;;  %1008 = vmatprep.subr.mxu1 %v861_v6  ;;  %v854_v7 = vld [vmem:[#allocation10 + $0x40] sm:$0xff] }
 0x1f9   :  { %1641 = vmatprep.mubr.msk.f32.mxu1 %vm133_vm0, %v1949_v9  ;;  %1009 = vmatpush1.msra.mxu1 %v860_v42  ;;  %v852_v9 = vld [vmem:[#allocation10 + $0x30] sm:$0xff] }
 0x1fa   :  { %1010 = vmatprep.subr.mxu1 %v859_v43  ;;  %1134 = vmatprep.subr.mxu0 %v1089_v59  ;;  %v1209_v43 = vlaneseq }
 0x1fb   :  { %1011 = vmatpush1.msra.mxu1 %v858_v5  ;;  %1135 = vmatpush1.msra.mxu0 %v1088_v62 }
 0x1fc   :  { %1642 = vmatmul.mubr.msk.f32.gmra.mxu1 %vm133_vm0, %v1964_v13  ;;  %1012 = vmatprep.subr.mxu1 %v857_v8  ;;  %v851_v13 = vld [vmem:[#allocation10 + $0x28] sm:$0xff] }
 0x1fd   :  { %1056 = vmatprep.mubr.f32.mxu1 %v1816_v60  ;;  %1013 = vmatpush1.msra.mxu1 %v856_v12  ;;  %v1210_v12 = vshrl.u32 %v1209_v43, 7 }
 0x1fe   :  { %1014 = vmatprep.subr.mxu1 %v855_v44  ;;  %1136 = vmatprep.subr.mxu0 %v1087_v63 }
 0x1ff   :  { %1015 = vmatpush1.msra.mxu1 %v854_v7  ;;  %1137 = vmatpush1.msra.mxu0 %v1086_v4  ;;  %v1215_v47 = vsub.s32 1, %v1210_v12 }
 0x200   :  { %1016 = vmatprep.subr.mxu1 %v853_v45  ;;  %1138 = vmatprep.subr.mxu0 %v1085_v10 }
 0x201   :  { %1017 = vmatpush1.msra.mxu1 %v852_v9  ;;  %1139 = vmatpush1.msra.mxu0 %v1084_v11 }
 0x202   :  { %1018 = vmatprep.subr.mxu1 %v851_v13  ;;  %1140 = vmatprep.subr.mxu0 %v1083_v14 }
 0x203   :  { %1019 = vmatpush1.msra.mxu1 %v850_v49  ;;  %1141 = vmatpush1.msra.mxu0 %v1082_v15 }
 0x204   :  { %1020 = vmatprep.subr.mxu1 %v849_v51 }
 0x205   :  { %1021 = vmatpush1.msra.mxu1 %v848_v53  ;;  %v1227_v53 = vld [vmem:[%s2067_s8] sm:$0x3] }
 0x206   :  { %1022 = vmatprep.subr.mxu1 %v847_v55 }
 0x207   :  { %1023 = vmatpush1.msra.mxu1 %v846_v57 }
 0x208   :  { %1291 = vmatprep.subr.mxu1 %v1262_v61 }
 0x2b0   :  { %v1626_v16 = vpop.f32.mrf.mxu1 }
 0x2b2   :  { %v742_v18 = vpop.f32.mrf.mxu1 }
 0x2b3   :  { %1442 = vmatmul.mubr.msk.f32.vlgmr.msra.gmra.mxu1 %vm345_vm1, %v742_v18  ;;  %v1236_v18 = vrot.slane %v1227_v53, %v1215_v47 }
 0x2b4   :  { %v1629_v21 = vpop.f32.mrf.mxu1  ;;  %1292 = vmatpush1.msra.mxu1 %v1261_v17  ;;  %1062 = vmatprep.mubr.f32.mxu1 %v1816_v60 }
 0x2b5   :  { %1293 = vmatprep.subr.mxu1 %v1260_v19  ;;  %v1272_v19 = vrot.slane %v1263_v54, %v1215_v47 }
 0x2b6   :  { %v752_v24 = vpop.f32.mrf.mxu1  ;;  %1294 = vmatpush1.msra.mxu1 %v1259_v20 }
 0x2b7   :  { %1443 = vmatmul.mubr.msk.f32.gmra.mxu1 %vm345_vm1, %v1626_v16  ;;  %1295 = vmatprep.subr.mxu1 %v1258_v22 }
 0x2b8   :  { %v1640_v27 = vpop.f32.mrf.mxu1  ;;  %1296 = vmatpush1.msra.mxu1 %v1257_v23  ;;  %1068 = vmatprep.mubr.f32.mxu1 %v1816_v60 }
 0x2b9   :  { %1297 = vmatprep.subr.mxu1 %v1256_v25 }
 0x2ba   :  { %v827_v29 = vpop.f32.mrf.mxu1  ;;  %1298 = vmatpush1.msra.mxu1 %v1255_v26 }
 0x2bb   :  { %1444 = vmatmul.mubr.msk.f32.gmra.mxu1 %vm345_vm1, %v752_v24  ;;  %1446 = vmatmul.mubr.msk.f32.vlgmr.msra.gmra.mxu0 %vm345_vm1, %v827_v29 }
 0x2bc   :  { %1299 = vmatprep.subr.mxu1 %v1254_v28  ;;  %1074 = vmatprep.mubr.f32.mxu1 %v1816_v60  ;;  %v1643_v33 = vpop.f32.mrf.mxu1 }
 0x2bd   :  { %1300 = vmatpush1.msra.mxu1 %v1253_v30  ;;  %1180 = vmatprep.mubr.f32.mxu0 %v1816_v60 }
 0x2be   :  { %1301 = vmatprep.subr.mxu1 %v1252_v31  ;;  %v837_v37 = vpop.f32.mrf.mxu1 }
 0x2bf   :  { %1302 = vmatpush1.msra.mxu1 %v1251_v32  ;;  %1447 = vmatmul.mubr.msk.f32.gmra.mxu0 %vm345_vm1, %v1640_v27 }
 0x2c0   :  { %1445 = vmatmul.mubr.msk.f32.gmra.mxu1 %vm345_vm1, %v1629_v21  ;;  %1303 = vmatprep.subr.mxu1 %v1250_v34 }
 0x2c1   :  { %1304 = vmatpush1.msra.mxu1 %v1249_v35  ;;  %1186 = vmatprep.mubr.f32.mxu0 %v1816_v60 }
 0x2c2   :  { %1305 = vmatprep.subr.mxu1 %v1248_v36  ;;  %1339 = vmatprep.mubr.f32.mxu1 %v1816_v60 }
 0x2c3   :  { %1306 = vmatpush1.msra.mxu1 %v1247_v38  ;;  %1448 = vmatmul.mubr.msk.f32.gmra.mxu0 %vm345_vm1, %v837_v37 }
 0x2c4   :  { %1450 = vmatmul.mubr.msk.f32.vlgmr.msra.gmra.mxu1 %vm345_vm1, %v1928_v3  ;;  %1192 = vmatprep.mubr.f32.mxu0 %v1816_v60  ;;  %v957_v3 = vpop.f32.mrf.mxu0 }
 0x2c5   :  { %1345 = vmatprep.mubr.f32.mxu1 %v1816_v60 }
 0x2c6   :  { %v959_v39 = vpop.f32.mrf.mxu0 }
 0x2c7   :  { %1449 = vmatmul.mubr.msk.f32.gmra.mxu0 %vm345_vm1, %v1643_v33 }
 0x2c8   :  { %1451 = vmatmul.mubr.msk.f32.gmra.mxu1 %vm345_vm1, %v1922_v2  ;;  %v963_v40 = vpop.f32.mrf.mxu0 }
 0x2c9   :  { %1351 = vmatprep.mubr.f32.mxu1 %v1816_v60 }
 0x2ca   :  { %v965_v41 = vpop.f32.mrf.mxu0 }
 0x2cc   :  { %1452 = vmatmul.mubr.msk.f32.gmra.mxu1 %vm345_vm1, %v1916_v1  ;;  %v969_v6 = vpop.f32.mrf.mxu0  ;;  %v1211_v1 = vsub.s32 0, %v1210_v12 }
 0x2cd   :  { %1357 = vmatprep.mubr.f32.mxu1 %v1816_v60  ;;  %v1207_v60 = vld [vmem:[%s2066_s7] sm:$0x3]  ;;  %s1817_s7 = smov [#allocation13]  }
 0x2ce   :  { %v971_v42 = vpop.f32.mrf.mxu0  ;;  %v1212_v49 = vrot.slane %v1207_v60, %v1211_v1  ;;  %v1216_v56 = vrot.slane %v1207_v60, %v1215_v47  ;;  %v1232_v4 = vrot.slane %v1227_v53, %v1211_v1  ;;  %v1268_v10 = vrot.slane %v1263_v54, %v1211_v1  ;;  %s1393_s8 = sshll.u32 %s1817_s7, 4  ;;  %s1394_s8 = int_to_ptr.vmem [resolvable:$true] %s1393_s8 }
 0x2cf   :  { %s1776_s10 = scalar_lea.vmem %s1394_s8, 1024  ;;  %p1781_p3 = scmp.lt.s32.totalorder %s1394_s8, %s1394_s8 }
 0x2d0   :  { %1453 = vmatmul.mubr.msk.f32.gmra.mxu1 %vm345_vm1, %v1914_v0  ;;  %v975_v8 = vpop.f32.mrf.mxu0  ;;  %p1777_p2 = scmp.ne.s32.totalorder %s1394_s8, %s1776_s10  ;;  %p1782_p4 = scmp.lt.s32.totalorder %s1776_s10, %s1776_s10 }
 0x2d2   :  { %v977_v7 = vpop.f32.mrf.mxu0  ;;  %p1783_p5 = por %p1782_p4, %p1781_p3 }
 0x2d4   :  { %p1784_p6 = pnand %p1783_p5, %p1777_p2 }
 0x373   :  { %v1058_v5 = vpop.f32.mrf.mxu1 }
 0x374   :  { %v1059_v0 = vadd.f32 %v1058_v5, %v957_v3 }
 0x375   :  { %v1060_v2 = vpop.f32.mrf.mxu1 }
 0x376   :  { %v1061_v13 = vadd.f32 %v1060_v2, %v959_v39 }
 0x377   :  { %v1064_v44 = vpop.f32.mrf.mxu1 }
 0x378   :  { %v1065_v52 = vadd.f32 %v1064_v44, %v963_v40 }
 0x379   :  { %v1066_v45 = vpop.f32.mrf.mxu1 }
 0x37a   :  { %v1067_v58 = vadd.f32 %v1066_v45, %v965_v41 }
 0x37b   :  { %v1070_v46 = vpop.f32.mrf.mxu1  ;;  %v1176_v9 = vpop.f32.mrf.mxu0 }
 0x37c   :  { %v1199_v48 = vadd.f32 %v1176_v9, %v1059_v0  ;;  %v1071_v11 = vadd.f32 %v1070_v46, %v969_v6 }
 0x37d   :  { %v1072_v50 = vpop.f32.mrf.mxu1  ;;  %v1178_v51 = vpop.f32.mrf.mxu0 }
 0x37e   :  { %v1200_v55 = vadd.f32 %v1178_v51, %v1061_v13  ;;  %v1219_v62 = vmul.f32 %v1212_v49, %v1199_v48  ;;  %v1073_v20 = vadd.f32 %v1072_v50, %v971_v42 }
 0x37f   :  { %v1182_v57 = vpop.f32.mrf.mxu0 }
 0x380   :  { %v1076_v59 = vpop.f32.mrf.mxu1  ;;  %v1201_v61 = vadd.f32 %v1182_v57, %v1065_v52  ;;  %v1220_v16 = vmul.f32 %v1216_v56, %v1200_v55  ;;  %v1239_v24 = vadd.f32 %v1232_v4, %v1219_v62 }
 0x381   :  { %v1184_v63 = vpop.f32.mrf.mxu0  ;;  %v1077_v30 = vadd.f32 %v1076_v59, %v975_v8 }
 0x382   :  { %v1078_v14 = vpop.f32.mrf.mxu1  ;;  %v1202_v15 = vadd.f32 %v1184_v63, %v1067_v58  ;;  %v1221_v21 = vmul.f32 %v1212_v49, %v1201_v61  ;;  %v1240_v32 = vadd.f32 %v1236_v18, %v1220_v16 }
 0x383   :  { %v1188_v17 = vpop.f32.mrf.mxu0  ;;  %v1079_v35 = vadd.f32 %v1078_v14, %v977_v7 }
 0x384   :  { %v1203_v22 = vadd.f32 %v1188_v17, %v1071_v11  ;;  %v1341_v23 = vpop.f32.mrf.mxu1  ;;  %v1222_v27 = vmul.f32 %v1216_v56, %v1202_v15  ;;  %v1241_v37 = vadd.f32 %v1232_v4, %v1221_v21 }
 0x385   :  { %v1342_v25 = vadd.f32 %v1341_v23, %v1268_v10  ;;  %v1190_v26 = vpop.f32.mrf.mxu0 }
 0x386   :  { %v1204_v28 = vadd.f32 %v1190_v26, %v1073_v20  ;;  %v1343_v29 = vpop.f32.mrf.mxu1  ;;  %v1223_v36 = vmul.f32 %v1212_v49, %v1203_v22  ;;  %v1242_v43 = vadd.f32 %v1236_v18, %v1222_v27 }
 0x387   :  { %v1364_v31 = vadd.f32 %v1342_v25, %v1239_v24  ;;  %v1344_v33 = vadd.f32 %v1343_v29, %v1272_v19  ;;  %v1194_v34 = vpop.f32.mrf.mxu0 }
 0x388   :  { %v1347_v38 = vpop.f32.mrf.mxu1  ;;  %v1205_v40 = vadd.f32 %v1194_v34, %v1077_v30  ;;  %v1224_v42 = vmul.f32 %v1216_v56, %v1204_v28  ;;  %v1243_v45 = vadd.f32 %v1232_v4, %v1223_v36 }
 0x389   :  { %v1372_v3 = vmax.f32 %v1364_v31, 0.0  ;;  %v1365_v39 = vadd.f32 %v1344_v33, %v1240_v32  ;;  %v1348_v41 = vadd.f32 %v1347_v38, %v1268_v10  ;;  %v1196_v6 = vpop.f32.mrf.mxu0 }
 0x38a   :  { %v1349_v5 = vpop.f32.mrf.mxu1  ;;  %v1206_v8 = vadd.f32 %v1196_v6, %v1079_v35  ;;  %v1225_v7 = vmul.f32 %v1212_v49, %v1205_v40  ;;  %v1244_v9 = vadd.f32 %v1236_v18, %v1224_v42 }
 0x38b   :  { %1380 = vst [vmem:[#allocation13] sm:$0xff] %v1372_v3  ;;  %v1373_v2 = vmax.f32 %v1365_v39, 0.0  ;;  %v1366_v12 = vadd.f32 %v1348_v41, %v1241_v37  ;;  %v1350_v44 = vadd.f32 %v1349_v5, %v1272_v19 }
 0x38c   :  { %v1353_v1 = vpop.f32.mrf.mxu1  ;;  %v1226_v13 = vmul.f32 %v1216_v56, %v1206_v8  ;;  %v1245_v55 = vadd.f32 %v1232_v4, %v1225_v7 }
 0x38d   :  { %1381 = vst [vmem:[#allocation13 + $0x8] sm:$0xff] %v1373_v2  ;;  %v1374_v60 = vmax.f32 %v1366_v12, 0.0  ;;  %v1367_v0 = vadd.f32 %v1350_v44, %v1242_v43  ;;  %v1354_v46 = vadd.f32 %v1353_v1, %v1268_v10 }
 0x38e   :  { %v1355_v47 = vpop.f32.mrf.mxu1  ;;  %v1246_v61 = vadd.f32 %v1236_v18, %v1226_v13 }
 0x38f   :  { %1382 = vst [vmem:[#allocation13 + $0x10] sm:$0xff] %v1374_v60  ;;  %v1375_v48 = vmax.f32 %v1367_v0, 0.0  ;;  %v1368_v50 = vadd.f32 %v1354_v46, %v1243_v45  ;;  %v1356_v51 = vadd.f32 %v1355_v47, %v1272_v19 }
 0x390   :  { %v1359_v52 = vpop.f32.mrf.mxu1 }
 0x391   :  { %1383 = vst [vmem:[#allocation13 + $0x18] sm:$0xff] %v1375_v48  ;;  %v1376_v53 = vmax.f32 %v1368_v50, 0.0  ;;  %v1369_v54 = vadd.f32 %v1356_v51, %v1244_v9  ;;  %v1360_v57 = vadd.f32 %v1359_v52, %v1268_v10 }
 0x392   :  { %v1361_v58 = vpop.f32.mrf.mxu1 }
 0x393   :  { %1384 = vst [vmem:[#allocation13 + $0x20] sm:$0xff] %v1376_v53  ;;  %v1377_v59 = vmax.f32 %v1369_v54, 0.0  ;;  %v1370_v49 = vadd.f32 %v1360_v57, %v1245_v55  ;;  %v1362_v62 = vadd.f32 %v1361_v58, %v1272_v19 }
 0x395   :  { %1385 = vst [vmem:[#allocation13 + $0x28] sm:$0xff] %v1377_v59  ;;  %v1378_v63 = vmax.f32 %v1370_v49, 0.0  ;;  %v1371_v56 = vadd.f32 %v1362_v62, %v1246_v61 }
 0x397   :  { %1386 = vst [vmem:[#allocation13 + $0x30] sm:$0xff] %v1378_v63  ;;  %v1379_v11 = vmax.f32 %v1371_v56, 0.0 }
 0x399   :  { %1387 = vst [vmem:[#allocation13 + $0x38] sm:$0xff] %v1379_v11 }
 0x39a   :  { %1787 = shalt.err (!%p1784_p6)
}
 0x39b   :  { %1399 = dma.vmem_to_hbm [thread:$0]  %s1394_s8, 1024, %s2070_s11, [#allocation4], %s1813_s0, %s1813_s0, %s1814_s21  }
 0x39c   :  { %1804 = dma.done.wait [#allocation4], 1024  }
 0x39d   :  { %1805 = vsyncadd [#allocation4], 4294966272 }
 0x39e   :  { %1403 = vsyncpa [#allocation3], 1 }
 0x39f   :  { %1404 = vsyncpa [#allocation6], 1 }
 0x3a0   :  { %1405 = vsyncpa [#allocation9], 1 }
 0x3a1   :  { %1406 = vsyncpa [#allocation12], 1 }
 0x3a2   :  { %1407 = vsyncpa [#allocation4], 1 }

// kernel: tpu_custom_call.1
= control target key start
LH: loop header
LB: loop body
LE: loop exit
PB: predicated region body
PF: predicated region fallthrough
CT: control target
= control target key end

     0   :  { %16 = vsyncpa [#allocation3], 0  ;;  %s2059_s0 = inlined_call_operand.hbm [shape: f32[32,64], index: 0, kind: input, shape index: {}]   ;;  %s2060_s1 = inlined_call_operand.hbm [shape: f32[32,32], index: 1, kind: input, shape index: {}]   ;;  %s2061_s2 = inlined_call_operand.hbm [shape: f32[32,32], index: 2, kind: input, shape index: {}]   ;;  %s2062_s3 = inlined_call_operand.hbm [shape: f32[3,64,64], index: 3, kind: input, shape index: {}]   ;;  %s2063_s4 = inlined_call_operand.vmem [shape: f32[1,64], index: 4, kind: input, shape index: {}]   ;;  %s2064_s5 = inlined_call_operand.vmem [shape: f32[1,64], index: 5, kind: input, shape index: {}]   ;;  %s2065_s6 = inlined_call_operand.hbm [shape: f32[3,64,256], index: 6, kind: input, shape index: {}]   ;;  %s2066_s7 = inlined_call_operand.vmem [shape: f32[1,256], index: 7, kind: input, shape index: {}]   ;;  %s2067_s8 = inlined_call_operand.vmem [shape: f32[1,256], index: 8, kind: input, shape index: {}]   ;;  %s2068_s9 = inlined_call_operand.hbm [shape: f32[64,256], index: 9, kind: input, shape index: {}]   ;;  %s2069_s10 = inlined_call_operand.vmem [shape: f32[1,256], index: 10, kind: input, shape index: {}]   ;;  %s2070_s11 = inlined_call_operand.hbm [shape: f32[32,256], index: 11, kind: output, shape index: {}]  }
   0x1   :  { %17 = vsyncpa [#allocation6], 0 }
   0x2   :  { %18 = vsyncpa [#allocation9], 0 }
   0x3   :  { %19 = vsyncpa [#allocation12], 0 }
   0x4   :  { %20 = vsyncpa [#allocation4], 0  ;;  %s1806_s17 = smov [#allocation5]   ;;  %s1807_s19 = smov [#allocation8]  }
   0x5   :  { %s38_s18 = sshll.u32 %s1806_s17, 4  ;;  %s62_s20 = sshll.u32 %s1807_s19, 4  ;;  %s39_s18 = int_to_ptr.vmem [resolvable:$true] %s38_s18  ;;  %s63_s20 = int_to_ptr.vmem [resolvable:$true] %s62_s20 }
   0x6   :  { %s1664_s21 = scalar_lea.vmem %s39_s18, 512  ;;  %p1669_p1 = scmp.lt.s32.totalorder %s39_s18, %s39_s18 }
   0x7   :  { %p1665_p0 = scmp.ne.s32.totalorder %s39_s18, %s1664_s21  ;;  %p1670_p2 = scmp.lt.s32.totalorder %s1664_s21, %s1664_s21 }
   0x9   :  { %p1671_p3 = por %p1670_p2, %p1669_p1 }
   0xb   :  { %p1672_p4 = pnand %p1671_p3, %p1665_p0 }
   0xd   :  { %1675 = shalt.err (!%p1672_p4)
}
   0xe   :  { %s1808_s22 = smov 128   ;;  %s1809_s23 = smov 8  }
   0xf   :  { %44 = dma.hbm_to_vmem [thread:$0]  %s2060_s1, 512, %s39_s18, [#allocation6], %s1808_s22, %s1808_s22, %s1809_s23  }
  0x10   :  { %s1684_s26 = scalar_lea.vmem %s63_s20, 3072  ;;  %p1689_p6 = scmp.lt.s32.totalorder %s63_s20, %s63_s20 }
  0x11   :  { %p1685_p5 = scmp.ne.s32.totalorder %s63_s20, %s1684_s26  ;;  %p1690_p7 = scmp.lt.s32.totalorder %s1684_s26, %s1684_s26 }
  0x13   :  { %p1691_p8 = por %p1690_p7, %p1689_p6 }
  0x15   :  { %p1692_p9 = pnand %p1691_p8, %p1685_p5 }
  0x17   :  { %1695 = shalt.err (!%p1692_p9)
}
  0x18   :  { %68 = dma.hbm_to_vmem [thread:$0]  %s2062_s3, 3072, %s63_s20, [#allocation9], %s1808_s22, %s1808_s22, %s1809_s23  }
  0x19   :  { %s1810_s29 = smov [#allocation2]   ;;  %s1811_s12 = smov [#allocation7]  }
  0x1a   :  { %s26_s30 = sshll.u32 %s1810_s29, 4  ;;  %s50_s13 = sshll.u32 %s1811_s12, 4  ;;  %s27_s30 = int_to_ptr.vmem [resolvable:$true] %s26_s30  ;;  %s51_s13 = int_to_ptr.vmem [resolvable:$true] %s50_s13 }
  0x1b   :  { %s1704_s1 = scalar_lea.vmem %s27_s30, 512  ;;  %p1709_p11 = scmp.lt.s32.totalorder %s27_s30, %s27_s30 }
  0x1c   :  { %p1705_p10 = scmp.ne.s32.totalorder %s27_s30, %s1704_s1  ;;  %p1710_p12 = scmp.lt.s32.totalorder %s1704_s1, %s1704_s1 }
  0x1e   :  { %p1711_p13 = por %p1710_p12, %p1709_p11 }
  0x20   :  { %p1712_p0 = pnand %p1711_p13, %p1705_p10 }
  0x22   :  { %1715 = shalt.err (!%p1712_p0)
}
  0x23   :  { %32 = dma.hbm_to_vmem [thread:$0]  %s2059_s0, 512, %s27_s30, [#allocation3], %s1808_s22, %s1808_s22, %s1809_s23  }
  0x24   :  { %s1724_s3 = scalar_lea.vmem %s51_s13, 512  ;;  %p1729_p2 = scmp.lt.s32.totalorder %s51_s13, %s51_s13 }
  0x25   :  { %p1725_p1 = scmp.ne.s32.totalorder %s51_s13, %s1724_s3  ;;  %p1730_p3 = scmp.lt.s32.totalorder %s1724_s3, %s1724_s3 }
  0x27   :  { %p1731_p4 = por %p1730_p3, %p1729_p2 }
  0x29   :  { %p1732_p5 = pnand %p1731_p4, %p1725_p1 }
  0x2b   :  { %1735 = shalt.err (!%p1732_p5)
}
  0x2c   :  { %56 = dma.hbm_to_vmem [thread:$0]  %s2061_s2, 512, %s51_s13, [#allocation6], %s1808_s22, %s1808_s22, %s1809_s23  }
  0x2d   :  { %s1812_s18 = smov [#allocation10]  }
  0x2e   :  { %s78_s19 = sshll.u32 %s1812_s18, 4  ;;  %s79_s19 = int_to_ptr.vmem [resolvable:$true] %s78_s19 }
  0x2f   :  { %s1744_s20 = scalar_lea.vmem %s79_s19, 6144  ;;  %p1749_p7 = scmp.lt.s32.totalorder %s79_s19, %s79_s19 }
  0x30   :  { %p1745_p6 = scmp.ne.s32.totalorder %s79_s19, %s1744_s20  ;;  %p1750_p8 = scmp.lt.s32.totalorder %s1744_s20, %s1744_s20 }
  0x32   :  { %p1751_p9 = por %p1750_p8, %p1749_p7 }
  0x34   :  { %p1752_p10 = pnand %p1751_p9, %p1745_p6 }
  0x36   :  { %1755 = shalt.err (!%p1752_p10)
}
  0x37   :  { %s1813_s0 = smov 256   ;;  %s1814_s21 = smov 16  }
  0x38   :  { %84 = dma.hbm_to_vmem [thread:$0]  %s2065_s6, 6144, %s79_s19, [#allocation9], %s1813_s0, %s1813_s0, %s1814_s21  }
  0x39   :  { %s1815_s2 = smov [#allocation11]  }
  0x3a   :  { %s94_s22 = sshll.u32 %s1815_s2, 4  ;;  %s95_s22 = int_to_ptr.vmem [resolvable:$true] %s94_s22 }
  0x3b   :  { %s1764_s23 = scalar_lea.vmem %s95_s22, 2048  ;;  %p1769_p12 = scmp.lt.s32.totalorder %s95_s22, %s95_s22 }
  0x3c   :  { %p1765_p11 = scmp.ne.s32.totalorder %s95_s22, %s1764_s23  ;;  %p1770_p13 = scmp.lt.s32.totalorder %s1764_s23, %s1764_s23 }
  0x3e   :  { %p1771_p0 = por %p1770_p13, %p1769_p12 }
  0x40   :  { %p1772_p1 = pnand %p1771_p0, %p1765_p11 }
  0x42   :  { %1775 = shalt.err (!%p1772_p1)
}
  0x43   :  { %100 = dma.hbm_to_vmem [thread:$0]  %s2068_s9, 2048, %s95_s22, [#allocation12], %s1813_s0, %s1813_s0, %s1814_s21  }
  0x44   :  { %1796 = dma.done.wait [#allocation3], 512  }
  0x45   :  { %1797 = vsyncadd [#allocation3], 4294966784 }
  0x46   :  { %1798 = dma.done.wait [#allocation6], 1024  }
  0x47   :  { %1799 = vsyncadd [#allocation6], 4294966272 }
  0x48   :  { %1800 = dma.done.wait [#allocation9], 9216  }
  0x49   :  { %1801 = vsyncadd [#allocation9], 4294958080 }
  0x4a   :  { %1802 = dma.done.wait [#allocation12], 2048  }
  0x4b   :  { %1803 = vsyncadd [#allocation12], 4294965248  ;;  %v1914_v0 = vld [vmem:[#allocation2 + $0x18] sm:$0xff]  ;;  %v1916_v1 = vld [vmem:[#allocation2 + $0x10] sm:$0xff]  ;;  %vm133_vm0 = vcmask 261120   ;;  %vm345_vm1 = vcmask 523264  }
  0x4c   :  { %1522 = vmatprep.subr.mxu0 %v1914_v0  ;;  %1536 = vmatprep.subr.mxu1 %v1914_v0  ;;  %v1922_v2 = vld [vmem:[#allocation2 + $0x8] sm:$0xff]  ;;  %v1928_v3 = vld [vmem:[#allocation2] sm:$0xff]  ;;  %v1947_v8 = vld [vmem:[#allocation5 + $0x10] sm:$0xff]  ;;  %v1816_v60 = vmov 0.0  }
  0x4d   :  { %1523 = vmatpush3.msra.mxu0 %v1914_v0  ;;  %1537 = vmatpush3.msra.mxu1 %v1914_v0  ;;  %v1932_v4 = vld [vmem:[#allocation5] sm:$0xff]  ;;  %v1940_v6 = vld [vmem:[#allocation5 + $0x8] sm:$0xff]  ;;  %v1949_v9 = vld [vmem:[#allocation7 + $0x10] sm:$0xff] }
  0x4e   :  { %1524 = vmatprep.subr.mxu0 %v1916_v1  ;;  %1538 = vmatprep.subr.mxu1 %v1916_v1  ;;  %v1936_v5 = vld [vmem:[#allocation7] sm:$0xff]  ;;  %v1942_v7 = vld [vmem:[#allocation7 + $0x8] sm:$0xff]  ;;  %v344_v10 = vld [vmem:[#allocation8 + $0x78] sm:$0xff] }
  0x4f   :  { %1525 = vmatpush3.msra.mxu0 %v1916_v1  ;;  %1539 = vmatpush3.msra.mxu1 %v1916_v1  ;;  %v335_v11 = vld [vmem:[#allocation8 + $0x38] sm:$0xff]  ;;  %v343_v14 = vld [vmem:[#allocation8 + $0x70] sm:$0xff]  ;;  %v342_v16 = vld [vmem:[#allocation8 + $0x68] sm:$0xff] }
  0x50   :  { %1526 = vmatprep.subr.mxu0 %v1922_v2  ;;  %1540 = vmatprep.subr.mxu1 %v1922_v2  ;;  %v1962_v12 = vld [vmem:[#allocation5 + $0x18] sm:$0xff]  ;;  %v334_v15 = vld [vmem:[#allocation8 + $0x30] sm:$0xff]  ;;  %v333_v17 = vld [vmem:[#allocation8 + $0x28] sm:$0xff] }
  0x51   :  { %1527 = vmatpush3.msra.mxu0 %v1922_v2  ;;  %1541 = vmatpush3.msra.mxu1 %v1922_v2  ;;  %v1964_v13 = vld [vmem:[#allocation7 + $0x18] sm:$0xff]  ;;  %v341_v18 = vld [vmem:[#allocation8 + $0x60] sm:$0xff]  ;;  %v339_v22 = vld [vmem:[#allocation8 + $0x50] sm:$0xff] }
  0x52   :  { %1528 = vmatprep.subr.mxu0 %v1928_v3  ;;  %1542 = vmatprep.subr.mxu1 %v1928_v3  ;;  %v332_v19 = vld [vmem:[#allocation8 + $0x20] sm:$0xff]  ;;  %v340_v20 = vld [vmem:[#allocation8 + $0x58] sm:$0xff]  ;;  %v330_v23 = vld [vmem:[#allocation8 + $0x10] sm:$0xff] }
  0x53   :  { %1529 = vmatpush3.msra.mxu0 %v1928_v3  ;;  %1530 = vmatprep.mubr.msk.f32.mxu0 %vm133_vm0, %v1932_v4  ;;  %v331_v21 = vld [vmem:[#allocation8 + $0x18] sm:$0xff]  ;;  %v338_v24 = vld [vmem:[#allocation8 + $0x48] sm:$0xff]  ;;  %v337_v25 = vld [vmem:[#allocation8 + $0x40] sm:$0xff] }
  0x54   :  { %1543 = vmatpush3.msra.mxu1 %v1928_v3  ;;  %1544 = vmatprep.mubr.msk.f32.mxu1 %vm133_vm0, %v1936_v5  ;;  %v548_v26 = vld [vmem:[#allocation8 + $0xb8] sm:$0xff]  ;;  %v547_v27 = vld [vmem:[#allocation8 + $0xb0] sm:$0xff]  ;;  %v546_v28 = vld [vmem:[#allocation8 + $0xa8] sm:$0xff] }
  0x55   :  { %1531 = vmatmul.mubr.msk.f32.vlgmr.msra.gmra.mxu0 %vm133_vm0, %v1940_v6  ;;  %1545 = vmatmul.mubr.msk.f32.vlgmr.msra.gmra.mxu1 %vm133_vm0, %v1942_v7  ;;  %v545_v29 = vld [vmem:[#allocation8 + $0xa0] sm:$0xff]  ;;  %v544_v30 = vld [vmem:[#allocation8 + $0x98] sm:$0xff]  ;;  %v543_v31 = vld [vmem:[#allocation8 + $0x90] sm:$0xff] }
  0x56   :  { %1533 = vmatprep.mubr.msk.f32.mxu0 %vm133_vm0, %v1947_v8  ;;  %1547 = vmatprep.mubr.msk.f32.mxu1 %vm133_vm0, %v1949_v9  ;;  %v329_v32 = vld [vmem:[#allocation8 + $0x8] sm:$0xff]  ;;  %v328_v34 = vld [vmem:[#allocation8] sm:$0xff]  ;;  %v878_v36 = vld [vmem:[#allocation10 + $0xf8] sm:$0xff] }
  0x57   :  { %1550 = vmatprep.subr.mxu0 %v344_v10  ;;  %1572 = vmatprep.subr.mxu1 %v335_v11  ;;  %v542_v33 = vld [vmem:[#allocation8 + $0x88] sm:$0xff]  ;;  %v541_v35 = vld [vmem:[#allocation8 + $0x80] sm:$0xff]  ;;  %v877_v41 = vld [vmem:[#allocation10 + $0xf0] sm:$0xff] }
  0x58   :  { %1551 = vmatpush3.msra.mxu0 %v344_v10  ;;  %1573 = vmatpush3.msra.mxu1 %v335_v11  ;;  %v876_v42 = vld [vmem:[#allocation10 + $0xe8] sm:$0xff]  ;;  %v875_v47 = vld [vmem:[#allocation10 + $0xe0] sm:$0xff]  ;;  %v874_v48 = vld [vmem:[#allocation10 + $0xd8] sm:$0xff] }
  0x59   :  { %1534 = vmatmul.mubr.msk.f32.gmra.mxu0 %vm133_vm0, %v1962_v12  ;;  %1548 = vmatmul.mubr.msk.f32.gmra.mxu1 %vm133_vm0, %v1964_v13  ;;  %v873_v49 = vld [vmem:[#allocation10 + $0xd0] sm:$0xff]  ;;  %v872_v50 = vld [vmem:[#allocation10 + $0xc8] sm:$0xff]  ;;  %v871_v51 = vld [vmem:[#allocation10 + $0xc0] sm:$0xff] }
  0x5a   :  { %1552 = vmatprep.subr.mxu0 %v343_v14  ;;  %1566 = vmatprep.mubr.msk.f32.mxu0 %vm345_vm1, %v1928_v3  ;;  %v870_v52 = vld [vmem:[#allocation10 + $0xb8] sm:$0xff]  ;;  %v869_v53 = vld [vmem:[#allocation10 + $0xb0] sm:$0xff]  ;;  %v868_v54 = vld [vmem:[#allocation10 + $0xa8] sm:$0xff] }
  0x5b   :  { %1553 = vmatpush3.msra.mxu0 %v343_v14  ;;  %1574 = vmatprep.subr.mxu1 %v334_v15  ;;  %v867_v55 = vld [vmem:[#allocation10 + $0xa0] sm:$0xff]  ;;  %v866_v56 = vld [vmem:[#allocation10 + $0x98] sm:$0xff]  ;;  %v865_v57 = vld [vmem:[#allocation10 + $0x90] sm:$0xff] }
  0x5c   :  { %1554 = vmatprep.subr.mxu0 %v342_v16  ;;  %1575 = vmatpush3.msra.mxu1 %v334_v15  ;;  %v864_v58 = vld [vmem:[#allocation10 + $0x88] sm:$0xff]  ;;  %v863_v59 = vld [vmem:[#allocation10 + $0x80] sm:$0xff] }
  0x5d   :  { %1555 = vmatpush3.msra.mxu0 %v342_v16  ;;  %1576 = vmatprep.subr.mxu1 %v333_v17 }
  0x5e   :  { %1556 = vmatprep.subr.mxu0 %v341_v18  ;;  %1577 = vmatpush3.msra.mxu1 %v333_v17 }
  0x5f   :  { %1557 = vmatpush3.msra.mxu0 %v341_v18  ;;  %1578 = vmatprep.subr.mxu1 %v332_v19 }
  0x60   :  { %1558 = vmatprep.subr.mxu0 %v340_v20  ;;  %1579 = vmatpush3.msra.mxu1 %v332_v19  ;;  %v1428_v19 = vld [vmem:[%s2063_s4] ss:$0 sm:$0xff] }
  0x61   :  { %1559 = vmatpush3.msra.mxu0 %v340_v20  ;;  %1580 = vmatprep.subr.mxu1 %v331_v21 }
  0x62   :  { %1560 = vmatprep.subr.mxu0 %v339_v22  ;;  %1581 = vmatpush3.msra.mxu1 %v331_v21 }
  0x63   :  { %1561 = vmatpush3.msra.mxu0 %v339_v22  ;;  %1582 = vmatprep.subr.mxu1 %v330_v23 }
  0x64   :  { %1562 = vmatprep.subr.mxu0 %v338_v24  ;;  %1583 = vmatpush3.msra.mxu1 %v330_v23 }
  0x65   :  { %1563 = vmatpush3.msra.mxu0 %v338_v24  ;;  %1584 = vmatprep.subr.mxu1 %v329_v32 }
  0x66   :  { %1564 = vmatprep.subr.mxu0 %v337_v25  ;;  %1585 = vmatpush3.msra.mxu1 %v329_v32 }
  0x67   :  { %1565 = vmatpush3.msra.mxu0 %v337_v25  ;;  %1586 = vmatprep.subr.mxu1 %v328_v34 }
  0x68   :  { %1594 = vmatprep.subr.mxu0 %v548_v26  ;;  %1567 = vmatmul.mubr.msk.f32.vlgmr.msra.gmra.mxu0 %vm345_vm1, %v1922_v2 }
  0x69   :  { %1595 = vmatpush3.msra.mxu0 %v548_v26  ;;  %1569 = vmatprep.mubr.msk.f32.mxu0 %vm345_vm1, %v1916_v1 }
  0x6a   :  { %1596 = vmatprep.subr.mxu0 %v547_v27  ;;  %1587 = vmatpush3.msra.mxu1 %v328_v34 }
  0x6b   :  { %1597 = vmatpush3.msra.mxu0 %v547_v27 }
  0x6c   :  { %1598 = vmatprep.subr.mxu0 %v546_v28  ;;  %1570 = vmatmul.mubr.msk.f32.gmra.mxu0 %vm345_vm1, %v1914_v0 }
  0x6d   :  { %1599 = vmatpush3.msra.mxu0 %v546_v28 }
  0x6e   :  { %1600 = vmatprep.subr.mxu0 %v545_v29 }
  0x6f   :  { %1601 = vmatpush3.msra.mxu0 %v545_v29  ;;  %v1429_v29 = vld [vmem:[%s2064_s5] ss:$0 sm:$0xff] }
  0x70   :  { %1602 = vmatprep.subr.mxu0 %v544_v30 }
  0x71   :  { %1603 = vmatpush3.msra.mxu0 %v544_v30 }
  0x72   :  { %1604 = vmatprep.subr.mxu0 %v543_v31 }
  0x73   :  { %1605 = vmatpush3.msra.mxu0 %v543_v31 }
  0x74   :  { %1606 = vmatprep.subr.mxu0 %v542_v33 }
  0x75   :  { %1607 = vmatpush3.msra.mxu0 %v542_v33 }
  0x76   :  { %1608 = vmatprep.subr.mxu0 %v541_v35 }
  0x77   :  { %1609 = vmatpush3.msra.mxu0 %v541_v35 }
  0x78   :  { %907 = vmatprep.subr.mxu0 %v878_v36 }
 0x115   :  { %v1532_v37 = vpop.f32.mrf.mxu0  ;;  %v1546_v38 = vpop.f32.mrf.mxu1 }
 0x117   :  { %v212_v39 = vpop.f32.mrf.mxu0  ;;  %v309_v40 = vpop.f32.mrf.mxu1 }
 0x118   :  { %1588 = vmatprep.mubr.msk.f32.mxu1 %vm345_vm1, %v212_v39  ;;  %1610 = vmatprep.mubr.msk.f32.mxu0 %vm345_vm1, %v309_v40 }
 0x119   :  { %v1535_v43 = vpop.f32.mrf.mxu0  ;;  %v1549_v44 = vpop.f32.mrf.mxu1  ;;  %1589 = vmatmul.mubr.msk.f32.vlgmr.msra.gmra.mxu1 %vm345_vm1, %v1532_v37  ;;  %1611 = vmatmul.mubr.msk.f32.vlgmr.msra.gmra.mxu0 %vm345_vm1, %v1546_v38 }
 0x11a   :  { %908 = vmatpush1.msra.mxu0 %v877_v41 }
 0x11b   :  { %v222_v45 = vpop.f32.mrf.mxu0  ;;  %v319_v46 = vpop.f32.mrf.mxu1  ;;  %909 = vmatprep.subr.mxu0 %v876_v42  ;;  %v860_v42 = vld [vmem:[#allocation10 + $0x70] sm:$0xff] }
 0x11c   :  { %1591 = vmatprep.mubr.msk.f32.mxu1 %vm345_vm1, %v222_v45  ;;  %1613 = vmatprep.mubr.msk.f32.mxu0 %vm345_vm1, %v319_v46  ;;  %v853_v45 = vld [vmem:[#allocation10 + $0x38] sm:$0xff] }
 0x11d   :  { %1592 = vmatmul.mubr.msk.f32.gmra.mxu1 %vm345_vm1, %v1535_v43  ;;  %1614 = vmatmul.mubr.msk.f32.gmra.mxu0 %vm345_vm1, %v1549_v44  ;;  %v859_v43 = vld [vmem:[#allocation10 + $0x68] sm:$0xff]  ;;  %v1097_v46 = vld [vmem:[#allocation10 + $0x178] sm:$0xff] }
 0x11e   :  { %1624 = vmatprep.mubr.msk.f32.mxu1 %vm133_vm0, %v1932_v4  ;;  %910 = vmatpush1.msra.mxu0 %v875_v47  ;;  %v855_v44 = vld [vmem:[#allocation10 + $0x48] sm:$0xff]  ;;  %v1096_v47 = vld [vmem:[#allocation10 + $0x170] sm:$0xff] }
 0x11f   :  { %911 = vmatprep.subr.mxu0 %v874_v48  ;;  %955 = vmatprep.mubr.f32.mxu0 %v1816_v60  ;;  %v1095_v48 = vld [vmem:[#allocation10 + $0x168] sm:$0xff] }
 0x120   :  { %912 = vmatpush1.msra.mxu0 %v873_v49  ;;  %v850_v49 = vld [vmem:[#allocation10 + $0x20] sm:$0xff] }
 0x121   :  { %913 = vmatprep.subr.mxu0 %v872_v50  ;;  %v1094_v50 = vld [vmem:[#allocation10 + $0x160] sm:$0xff] }
 0x122   :  { %914 = vmatpush1.msra.mxu0 %v871_v51  ;;  %v849_v51 = vld [vmem:[#allocation10 + $0x18] sm:$0xff] }
 0x123   :  { %915 = vmatprep.subr.mxu0 %v870_v52  ;;  %v1093_v52 = vld [vmem:[#allocation10 + $0x158] sm:$0xff] }
 0x124   :  { %916 = vmatpush1.msra.mxu0 %v869_v53  ;;  %v848_v53 = vld [vmem:[#allocation10 + $0x10] sm:$0xff] }
 0x125   :  { %917 = vmatprep.subr.mxu0 %v868_v54  ;;  %v1092_v54 = vld [vmem:[#allocation10 + $0x150] sm:$0xff] }
 0x126   :  { %918 = vmatpush1.msra.mxu0 %v867_v55  ;;  %v847_v55 = vld [vmem:[#allocation10 + $0x8] sm:$0xff] }
 0x127   :  { %919 = vmatprep.subr.mxu0 %v866_v56  ;;  %v1091_v56 = vld [vmem:[#allocation10 + $0x148] sm:$0xff] }
 0x128   :  { %920 = vmatpush1.msra.mxu0 %v865_v57  ;;  %v1568_v61 = vpop.f32.mrf.mxu0  ;;  %v846_v57 = vld [vmem:[#allocation10] sm:$0xff] }
 0x129   :  { %921 = vmatprep.subr.mxu0 %v864_v58  ;;  %v1090_v58 = vld [vmem:[#allocation10 + $0x140] sm:$0xff] }
 0x12a   :  { %922 = vmatpush1.msra.mxu0 %v863_v59  ;;  %v424_v62 = vpop.f32.mrf.mxu0  ;;  %v1089_v59 = vld [vmem:[#allocation10 + $0x138] sm:$0xff] }
 0x12b   :  { %1126 = vmatprep.subr.mxu0 %v1097_v46 }
 0x12c   :  { %v1571_v63 = vpop.f32.mrf.mxu0 }
 0x12e   :  { %v434_v4 = vpop.f32.mrf.mxu0 }
 0x1d9   :  { %v1590_v10 = vpop.f32.mrf.mxu1  ;;  %v1612_v11 = vpop.f32.mrf.mxu0 }
 0x1da   :  { %v527_v14 = vadd.f32 %v1590_v10, %v1568_v61  ;;  %v1262_v61 = vld [vmem:[#allocation11 + $0x78] sm:$0xff] }
 0x1db   :  { %v521_v15 = vpop.f32.mrf.mxu1  ;;  %v627_v16 = vpop.f32.mrf.mxu0  ;;  %v1085_v10 = vld [vmem:[#allocation10 + $0x118] sm:$0xff] }
 0x1dc   :  { %v647_v17 = vadd.f32 %v1612_v11, %v527_v14  ;;  %v522_v18 = vadd.f32 %v521_v15, %v424_v62  ;;  %v1088_v62 = vld [vmem:[#allocation10 + $0x130] sm:$0xff]  ;;  %v1083_v14 = vld [vmem:[#allocation10 + $0x108] sm:$0xff]  ;;  %v1082_v15 = vld [vmem:[#allocation10 + $0x100] sm:$0xff] }
 0x1dd   :  { %v1593_v20 = vpop.f32.mrf.mxu1  ;;  %v1615_v21 = vpop.f32.mrf.mxu0  ;;  %v1084_v11 = vld [vmem:[#allocation10 + $0x110] sm:$0xff] }
 0x1de   :  { %v646_v22 = vadd.f32 %v627_v16, %v522_v18  ;;  %v537_v23 = vadd.f32 %v1593_v20, %v1571_v63  ;;  %v658_v25 = vmul.f32 %v1428_v19, %v647_v17  ;;  %v1087_v63 = vld [vmem:[#allocation10 + $0x128] sm:$0xff]  ;;  %v1261_v17 = vld [vmem:[#allocation11 + $0x70] sm:$0xff]  ;;  %v1259_v20 = vld [vmem:[#allocation11 + $0x60] sm:$0xff] }
 0x1df   :  { %v531_v24 = vpop.f32.mrf.mxu1  ;;  %v637_v30 = vpop.f32.mrf.mxu0 }
 0x1e0   :  { %v657_v26 = vmul.f32 %v1428_v19, %v646_v22  ;;  %v649_v27 = vadd.f32 %v1615_v21, %v537_v23  ;;  %v532_v28 = vadd.f32 %v531_v24, %v434_v4  ;;  %v669_v34 = vadd.f32 %v1429_v29, %v658_v25  ;;  %v1086_v4 = vld [vmem:[#allocation10 + $0x120] sm:$0xff]  ;;  %v1258_v22 = vld [vmem:[#allocation11 + $0x58] sm:$0xff]  ;;  %v1257_v23 = vld [vmem:[#allocation11 + $0x50] sm:$0xff] }
 0x1e1   :  { %v1256_v25 = vld [vmem:[#allocation11 + $0x48] sm:$0xff] }
 0x1e2   :  { %v668_v31 = vadd.f32 %v1429_v29, %v657_v26  ;;  %v660_v32 = vmul.f32 %v1428_v19, %v649_v27  ;;  %v648_v33 = vadd.f32 %v637_v30, %v532_v28  ;;  %v673_v40 = vmax.f32 %v669_v34, 0.0  ;;  %v1255_v26 = vld [vmem:[#allocation11 + $0x40] sm:$0xff]  ;;  %v1254_v28 = vld [vmem:[#allocation11 + $0x38] sm:$0xff]  ;;  %v1253_v30 = vld [vmem:[#allocation11 + $0x30] sm:$0xff] }
 0x1e3   :  { %v1250_v34 = vld [vmem:[#allocation11 + $0x18] sm:$0xff] }
 0x1e4   :  { %v672_v35 = vmax.f32 %v668_v31, 0.0  ;;  %v671_v36 = vadd.f32 %v1429_v29, %v660_v32  ;;  %v659_v37 = vmul.f32 %v1428_v19, %v648_v33  ;;  %v1260_v19 = vld [vmem:[#allocation11 + $0x68] sm:$0xff]  ;;  %v1251_v32 = vld [vmem:[#allocation11 + $0x20] sm:$0xff] }
 0x1e5   :  { %v1252_v31 = vld [vmem:[#allocation11 + $0x28] sm:$0xff] }
 0x1e6   :  { %v675_v38 = vmax.f32 %v671_v36, 0.0  ;;  %v670_v39 = vadd.f32 %v1429_v29, %v659_v37  ;;  %1438 = vmatmul.mubr.msk.f32.vlgmr.msra.gmra.mxu0 %vm345_vm1, %v672_v35  ;;  %v1248_v36 = vld [vmem:[#allocation11 + $0x8] sm:$0xff] }
 0x1e7   :  { %961 = vmatprep.mubr.f32.mxu0 %v1816_v60  ;;  %1127 = vmatpush1.msra.mxu0 %v1096_v47 }
 0x1e8   :  { %v674_v41 = vmax.f32 %v670_v39, 0.0  ;;  %1616 = vmatprep.subr.mxu1 %v675_v38  ;;  %1128 = vmatprep.subr.mxu0 %v1095_v48 }
 0x1e9   :  { %1617 = vmatpush3.msra.mxu1 %v675_v38  ;;  %1129 = vmatpush1.msra.mxu0 %v1094_v50 }
 0x1ea   :  { %1618 = vmatprep.subr.mxu1 %v674_v41  ;;  %1439 = vmatmul.mubr.msk.f32.gmra.mxu0 %vm345_vm1, %v673_v40 }
 0x1eb   :  { %1619 = vmatpush3.msra.mxu1 %v674_v41  ;;  %967 = vmatprep.mubr.f32.mxu0 %v1816_v60 }
 0x1ec   :  { %1620 = vmatprep.subr.mxu1 %v673_v40  ;;  %1130 = vmatprep.subr.mxu0 %v1093_v52 }
 0x1ed   :  { %1621 = vmatpush3.msra.mxu1 %v673_v40  ;;  %1131 = vmatpush1.msra.mxu0 %v1092_v54  ;;  %v1263_v54 = vld [vmem:[%s2069_s10] sm:$0x3] }
 0x1ee   :  { %1622 = vmatprep.subr.mxu1 %v672_v35  ;;  %1440 = vmatmul.mubr.msk.f32.gmra.mxu0 %vm345_vm1, %v674_v41 }
 0x1ef   :  { %1623 = vmatpush3.msra.mxu1 %v672_v35  ;;  %973 = vmatprep.mubr.f32.mxu0 %v1816_v60 }
 0x1f0   :  { %1625 = vmatmul.mubr.msk.f32.vlgmr.msra.gmra.mxu1 %vm133_vm0, %v1940_v6  ;;  %1630 = vmatprep.subr.mxu1 %v675_v38  ;;  %v861_v6 = vld [vmem:[#allocation10 + $0x78] sm:$0xff] }
 0x1f1   :  { %1631 = vmatpush3.msra.mxu1 %v675_v38  ;;  %1627 = vmatprep.mubr.msk.f32.mxu1 %vm133_vm0, %v1947_v8  ;;  %v857_v8 = vld [vmem:[#allocation10 + $0x58] sm:$0xff] }
 0x1f2   :  { %1632 = vmatprep.subr.mxu1 %v674_v41  ;;  %1441 = vmatmul.mubr.msk.f32.gmra.mxu0 %vm345_vm1, %v675_v38  ;;  %v1247_v38 = vld [vmem:[#allocation11] sm:$0xff] }
 0x1f3   :  { %1633 = vmatpush3.msra.mxu1 %v674_v41  ;;  %1174 = vmatprep.mubr.f32.mxu0 %v1816_v60 }
 0x1f4   :  { %1628 = vmatmul.mubr.msk.f32.gmra.mxu1 %vm133_vm0, %v1962_v12  ;;  %1634 = vmatprep.subr.mxu1 %v673_v40  ;;  %v856_v12 = vld [vmem:[#allocation10 + $0x50] sm:$0xff] }
 0x1f5   :  { %1635 = vmatpush3.msra.mxu1 %v673_v40  ;;  %1638 = vmatprep.mubr.msk.f32.mxu1 %vm133_vm0, %v1936_v5  ;;  %v858_v5 = vld [vmem:[#allocation10 + $0x60] sm:$0xff] }
 0x1f6   :  { %1636 = vmatprep.subr.mxu1 %v672_v35  ;;  %1132 = vmatprep.subr.mxu0 %v1091_v56 }
 0x1f7   :  { %1637 = vmatpush3.msra.mxu1 %v672_v35  ;;  %1133 = vmatpush1.msra.mxu0 %v1090_v58  ;;  %v1249_v35 = vld [vmem:[#allocation11 + $0x10] sm:$0xff] }
 0x1f8   :  { %1639 = vmatmul.mubr.msk.f32.vlgmr.msra.gmra.mxu1 %vm133_vm0, %v1942_v7  ;;  %1008 = vmatprep.subr.mxu1 %v861_v6  ;;  %v854_v7 = vld [vmem:[#allocation10 + $0x40] sm:$0xff] }
 0x1f9   :  { %1641 = vmatprep.mubr.msk.f32.mxu1 %vm133_vm0, %v1949_v9  ;;  %1009 = vmatpush1.msra.mxu1 %v860_v42  ;;  %v852_v9 = vld [vmem:[#allocation10 + $0x30] sm:$0xff] }
 0x1fa   :  { %1010 = vmatprep.subr.mxu1 %v859_v43  ;;  %1134 = vmatprep.subr.mxu0 %v1089_v59  ;;  %v1209_v43 = vlaneseq }
 0x1fb   :  { %1011 = vmatpush1.msra.mxu1 %v858_v5  ;;  %1135 = vmatpush1.msra.mxu0 %v1088_v62 }
 0x1fc   :  { %1642 = vmatmul.mubr.msk.f32.gmra.mxu1 %vm133_vm0, %v1964_v13  ;;  %1012 = vmatprep.subr.mxu1 %v857_v8  ;;  %v851_v13 = vld [vmem:[#allocation10 + $0x28] sm:$0xff] }
 0x1fd   :  { %1056 = vmatprep.mubr.f32.mxu1 %v1816_v60  ;;  %1013 = vmatpush1.msra.mxu1 %v856_v12  ;;  %v1210_v12 = vshrl.u32 %v1209_v43, 7 }
 0x1fe   :  { %1014 = vmatprep.subr.mxu1 %v855_v44  ;;  %1136 = vmatprep.subr.mxu0 %v1087_v63 }
 0x1ff   :  { %1015 = vmatpush1.msra.mxu1 %v854_v7  ;;  %1137 = vmatpush1.msra.mxu0 %v1086_v4  ;;  %v1215_v47 = vsub.s32 1, %v1210_v12 }
 0x200   :  { %1016 = vmatprep.subr.mxu1 %v853_v45  ;;  %1138 = vmatprep.subr.mxu0 %v1085_v10 }
 0x201   :  { %1017 = vmatpush1.msra.mxu1 %v852_v9  ;;  %1139 = vmatpush1.msra.mxu0 %v1084_v11 }
 0x202   :  { %1018 = vmatprep.subr.mxu1 %v851_v13  ;;  %1140 = vmatprep.subr.mxu0 %v1083_v14 }
 0x203   :  { %1019 = vmatpush1.msra.mxu1 %v850_v49  ;;  %1141 = vmatpush1.msra.mxu0 %v1082_v15 }
 0x204   :  { %1020 = vmatprep.subr.mxu1 %v849_v51 }
 0x205   :  { %1021 = vmatpush1.msra.mxu1 %v848_v53  ;;  %v1227_v53 = vld [vmem:[%s2067_s8] sm:$0x3] }
 0x206   :  { %1022 = vmatprep.subr.mxu1 %v847_v55 }
 0x207   :  { %1023 = vmatpush1.msra.mxu1 %v846_v57 }
 0x208   :  { %1291 = vmatprep.subr.mxu1 %v1262_v61 }
 0x2b0   :  { %v1626_v16 = vpop.f32.mrf.mxu1 }
 0x2b2   :  { %v742_v18 = vpop.f32.mrf.mxu1 }
 0x2b3   :  { %1442 = vmatmul.mubr.msk.f32.vlgmr.msra.gmra.mxu1 %vm345_vm1, %v742_v18  ;;  %v1236_v18 = vrot.slane %v1227_v53, %v1215_v47 }
 0x2b4   :  { %v1629_v21 = vpop.f32.mrf.mxu1  ;;  %1292 = vmatpush1.msra.mxu1 %v1261_v17  ;;  %1062 = vmatprep.mubr.f32.mxu1 %v1816_v60 }
 0x2b5   :  { %1293 = vmatprep.subr.mxu1 %v1260_v19  ;;  %v1272_v19 = vrot.slane %v1263_v54, %v1215_v47 }
 0x2b6   :  { %v752_v24 = vpop.f32.mrf.mxu1  ;;  %1294 = vmatpush1.msra.mxu1 %v1259_v20 }
 0x2b7   :  { %1443 = vmatmul.mubr.msk.f32.gmra.mxu1 %vm345_vm1, %v1626_v16  ;;  %1295 = vmatprep.subr.mxu1 %v1258_v22 }
 0x2b8   :  { %v1640_v27 = vpop.f32.mrf.mxu1  ;;  %1296 = vmatpush1.msra.mxu1 %v1257_v23  ;;  %1068 = vmatprep.mubr.f32.mxu1 %v1816_v60 }
 0x2b9   :  { %1297 = vmatprep.subr.mxu1 %v1256_v25 }
 0x2ba   :  { %v827_v29 = vpop.f32.mrf.mxu1  ;;  %1298 = vmatpush1.msra.mxu1 %v1255_v26 }
 0x2bb   :  { %1444 = vmatmul.mubr.msk.f32.gmra.mxu1 %vm345_vm1, %v752_v24  ;;  %1446 = vmatmul.mubr.msk.f32.vlgmr.msra.gmra.mxu0 %vm345_vm1, %v827_v29 }
 0x2bc   :  { %1299 = vmatprep.subr.mxu1 %v1254_v28  ;;  %1074 = vmatprep.mubr.f32.mxu1 %v1816_v60  ;;  %v1643_v33 = vpop.f32.mrf.mxu1 }
 0x2bd   :  { %1300 = vmatpush1.msra.mxu1 %v1253_v30  ;;  %1180 = vmatprep.mubr.f32.mxu0 %v1816_v60 }
 0x2be   :  { %1301 = vmatprep.subr.mxu1 %v1252_v31  ;;  %v837_v37 = vpop.f32.mrf.mxu1 }
 0x2bf   :  { %1302 = vmatpush1.msra.mxu1 %v1251_v32  ;;  %1447 = vmatmul.mubr.msk.f32.gmra.mxu0 %vm345_vm1, %v1640_v27 }
 0x2c0   :  { %1445 = vmatmul.mubr.msk.f32.gmra.mxu1 %vm345_vm1, %v1629_v21  ;;  %1303 = vmatprep.subr.mxu1 %v1250_v34 }
 0x2c1   :  { %1304 = vmatpush1.msra.mxu1 %v1249_v35  ;;  %1186 = vmatprep.mubr.f32.mxu0 %v1816_v60 }
 0x2c2   :  { %1305 = vmatprep.subr.mxu1 %v1248_v36  ;;  %1339 = vmatprep.mubr.f32.mxu1 %v1816_v60 }
 0x2c3   :  { %1306 = vmatpush1.msra.mxu1 %v1247_v38  ;;  %1448 = vmatmul.mubr.msk.f32.gmra.mxu0 %vm345_vm1, %v837_v37 }
 0x2c4   :  { %1450 = vmatmul.mubr.msk.f32.vlgmr.msra.gmra.mxu1 %vm345_vm1, %v1928_v3  ;;  %1192 = vmatprep.mubr.f32.mxu0 %v1816_v60  ;;  %v957_v3 = vpop.f32.mrf.mxu0 }
 0x2c5   :  { %1345 = vmatprep.mubr.f32.mxu1 %v1816_v60 }
 0x2c6   :  { %v959_v39 = vpop.f32.mrf.mxu0 }
 0x2c7   :  { %1449 = vmatmul.mubr.msk.f32.gmra.mxu0 %vm345_vm1, %v1643_v33 }
 0x2c8   :  { %1451 = vmatmul.mubr.msk.f32.gmra.mxu1 %vm345_vm1, %v1922_v2  ;;  %v963_v40 = vpop.f32.mrf.mxu0 }
 0x2c9   :  { %1351 = vmatprep.mubr.f32.mxu1 %v1816_v60 }
 0x2ca   :  { %v965_v41 = vpop.f32.mrf.mxu0 }
 0x2cc   :  { %1452 = vmatmul.mubr.msk.f32.gmra.mxu1 %vm345_vm1, %v1916_v1  ;;  %v969_v6 = vpop.f32.mrf.mxu0  ;;  %v1211_v1 = vsub.s32 0, %v1210_v12 }
 0x2cd   :  { %1357 = vmatprep.mubr.f32.mxu1 %v1816_v60  ;;  %v1207_v60 = vld [vmem:[%s2066_s7] sm:$0x3]  ;;  %s1817_s7 = smov [#allocation13]  }
 0x2ce   :  { %v971_v42 = vpop.f32.mrf.mxu0  ;;  %v1212_v49 = vrot.slane %v1207_v60, %v1211_v1  ;;  %v1216_v56 = vrot.slane %v1207_v60, %v1215_v47  ;;  %v1232_v4 = vrot.slane %v1227_v53, %v1211_v1  ;;  %v1268_v10 = vrot.slane %v1263_v54, %v1211_v1  ;;  %s1393_s8 = sshll.u32 %s1817_s7, 4  ;;  %s1394_s8 = int_to_ptr.vmem [resolvable:$true] %s1393_s8 }
 0x2cf   :  { %s1776_s10 = scalar_lea.vmem %s1394_s8, 1024  ;;  %p1781_p3 = scmp.lt.s32.totalorder %s1394_s8, %s1394_s8 }
 0x2d0   :  { %1453 = vmatmul.mubr.msk.f32.gmra.mxu1 %vm345_vm1, %v1914_v0  ;;  %v975_v8 = vpop.f32.mrf.mxu0  ;;  %p1777_p2 = scmp.ne.s32.totalorder %s1394_s8, %s1776_s10  ;;  %p1782_p4 = scmp.lt.s32.totalorder %s1776_s10, %s1776_s10 }
 0x2d2   :  { %v977_v7 = vpop.f32.mrf.mxu0  ;;  %p1783_p5 = por %p1782_p4, %p1781_p3 }
 0x2d4   :  { %p1784_p6 = pnand %p1783_p5, %p1777_p2 }
 0x373   :  { %v1058_v5 = vpop.f32.mrf.mxu1 }
 0x374   :  { %v1059_v0 = vadd.f32 %v1058_v5, %v957_v3 }
 0x375   :  { %v1060_v2 = vpop.f32.mrf.mxu1 }
 0x376   :  { %v1061_v13 = vadd.f32 %v1060_v2, %v959_v39 }
 0x377   :  { %v1064_v44 = vpop.f32.mrf.mxu1 }
 0x378   :  { %v1065_v52 = vadd.f32 %v1064_v44, %v963_v40 }
 0x379   :  { %v1066_v45 = vpop.f32.mrf.mxu1 }
 0x37a   :  { %v1067_v58 = vadd.f32 %v1066_v45, %v965_v41 }
 0x37b   :  { %v1070_v46 = vpop.f32.mrf.mxu1  ;;  %v1176_v9 = vpop.f32.mrf.mxu0 }
 0x37c   :  { %v1199_v48 = vadd.f32 %v1176_v9, %v1059_v0  ;;  %v1071_v11 = vadd.f32 %v1070_v46, %v969_v6 }
 0x37d   :  { %v1072_v50 = vpop.f32.mrf.mxu1  ;;  %v1178_v51 = vpop.f32.mrf.mxu0 }
 0x37e   :  { %v1200_v55 = vadd.f32 %v1178_v51, %v1061_v13  ;;  %v1219_v62 = vmul.f32 %v1212_v49, %v1199_v48  ;;  %v1073_v20 = vadd.f32 %v1072_v50, %v971_v42 }
 0x37f   :  { %v1182_v57 = vpop.f32.mrf.mxu0 }
 0x380   :  { %v1076_v59 = vpop.f32.mrf.mxu1  ;;  %v1201_v61 = vadd.f32 %v1182_v57, %v1065_v52  ;;  %v1220_v16 = vmul.f32 %v1216_v56, %v1200_v55  ;;  %v1239_v24 = vadd.f32 %v1232_v4, %v1219_v62 }
 0x381   :  { %v1184_v63 = vpop.f32.mrf.mxu0  ;;  %v1077_v30 = vadd.f32 %v1076_v59, %v975_v8 }
 0x382   :  { %v1078_v14 = vpop.f32.mrf.mxu1  ;;  %v1202_v15 = vadd.f32 %v1184_v63, %v1067_v58  ;;  %v1221_v21 = vmul.f32 %v1212_v49, %v1201_v61  ;;  %v1240_v32 = vadd.f32 %v1236_v18, %v1220_v16 }
 0x383   :  { %v1188_v17 = vpop.f32.mrf.mxu0  ;;  %v1079_v35 = vadd.f32 %v1078_v14, %v977_v7 }
 0x384   :  { %v1203_v22 = vadd.f32 %v1188_v17, %v1071_v11  ;;  %v1341_v23 = vpop.f32.mrf.mxu1  ;;  %v1222_v27 = vmul.f32 %v1216_v56, %v1202_v15  ;;  %v1241_v37 = vadd.f32 %v1232_v4, %v1221_v21 }
 0x385   :  { %v1342_v25 = vadd.f32 %v1341_v23, %v1268_v10  ;;  %v1190_v26 = vpop.f32.mrf.mxu0 }
 0x386   :  { %v1204_v28 = vadd.f32 %v1190_v26, %v1073_v20  ;;  %v1343_v29 = vpop.f32.mrf.mxu1  ;;  %v1223_v36 = vmul.f32 %v1212_v49, %v1203_v22  ;;  %v1242_v43 = vadd.f32 %v1236_v18, %v1222_v27 }
 0x387   :  { %v1364_v31 = vadd.f32 %v1342_v25, %v1239_v24  ;;  %v1344_v33 = vadd.f32 %v1343_v29, %v1272_v19  ;;  %v1194_v34 = vpop.f32.mrf.mxu0 }
 0x388   :  { %v1347_v38 = vpop.f32.mrf.mxu1  ;;  %v1205_v40 = vadd.f32 %v1194_v34, %v1077_v30  ;;  %v1224_v42 = vmul.f32 %v1216_v56, %v1204_v28  ;;  %v1243_v45 = vadd.f32 %v1232_v4, %v1223_v36 }
 0x389   :  { %v1372_v3 = vmax.f32 %v1364_v31, 0.0  ;;  %v1365_v39 = vadd.f32 %v1344_v33, %v1240_v32  ;;  %v1348_v41 = vadd.f32 %v1347_v38, %v1268_v10  ;;  %v1196_v6 = vpop.f32.mrf.mxu0 }
 0x38a   :  { %v1349_v5 = vpop.f32.mrf.mxu1  ;;  %v1206_v8 = vadd.f32 %v1196_v6, %v1079_v35  ;;  %v1225_v7 = vmul.f32 %v1212_v49, %v1205_v40  ;;  %v1244_v9 = vadd.f32 %v1236_v18, %v1224_v42 }
 0x38b   :  { %1380 = vst [vmem:[#allocation13] sm:$0xff] %v1372_v3  ;;  %v1373_v2 = vmax.f32 %v1365_v39, 0.0  ;;  %v1366_v12 = vadd.f32 %v1348_v41, %v1241_v37  ;;  %v1350_v44 = vadd.f32 %v1349_v5, %v1272_v19 }
 0x38c   :  { %v1353_v1 = vpop.f32.mrf.mxu1  ;;  %v1226_v13 = vmul.f32 %v1216_v56, %v1206_v8  ;;  %v1245_v55 = vadd.f32 %v1232_v4, %v1225_v7 }
 0x38d   :  { %1381 = vst [vmem:[#allocation13 + $0x8] sm:$0xff] %v1373_v2  ;;  %v1374_v60 = vmax.f32 %v1366_v12, 0.0  ;;  %v1367_v0 = vadd.f32 %v1350_v44, %v1242_v43  ;;  %v1354_v46 = vadd.f32 %v1353_v1, %v1268_v10 }
 0x38e   :  { %v1355_v47 = vpop.f32.mrf.mxu1  ;;  %v1246_v61 = vadd.f32 %v1236_v18, %v1226_v13 }
 0x38f   :  { %1382 = vst [vmem:[#allocation13 + $0x10] sm:$0xff] %v1374_v60  ;;  %v1375_v48 = vmax.f32 %v1367_v0, 0.0  ;;  %v1368_v50 = vadd.f32 %v1354_v46, %v1243_v45  ;;  %v1356_v51 = vadd.f32 %v1355_v47, %v1272_v19 }
 0x390   :  { %v1359_v52 = vpop.f32.mrf.mxu1 }
 0x391   :  { %1383 = vst [vmem:[#allocation13 + $0x18] sm:$0xff] %v1375_v48  ;;  %v1376_v53 = vmax.f32 %v1368_v50, 0.0  ;;  %v1369_v54 = vadd.f32 %v1356_v51, %v1244_v9  ;;  %v1360_v57 = vadd.f32 %v1359_v52, %v1268_v10 }
 0x392   :  { %v1361_v58 = vpop.f32.mrf.mxu1 }
 0x393   :  { %1384 = vst [vmem:[#allocation13 + $0x20] sm:$0xff] %v1376_v53  ;;  %v1377_v59 = vmax.f32 %v1369_v54, 0.0  ;;  %v1370_v49 = vadd.f32 %v1360_v57, %v1245_v55  ;;  %v1362_v62 = vadd.f32 %v1361_v58, %v1272_v19 }
 0x395   :  { %1385 = vst [vmem:[#allocation13 + $0x28] sm:$0xff] %v1377_v59  ;;  %v1378_v63 = vmax.f32 %v1370_v49, 0.0  ;;  %v1371_v56 = vadd.f32 %v1362_v62, %v1246_v61 }
 0x397   :  { %1386 = vst [vmem:[#allocation13 + $0x30] sm:$0xff] %v1378_v63  ;;  %v1379_v11 = vmax.f32 %v1371_v56, 0.0 }
 0x399   :  { %1387 = vst [vmem:[#allocation13 + $0x38] sm:$0xff] %v1379_v11 }
 0x39a   :  { %1787 = shalt.err (!%p1784_p6)
}
 0x39b   :  { %1399 = dma.vmem_to_hbm [thread:$0]  %s1394_s8, 1024, %s2070_s11, [#allocation4], %s1813_s0, %s1813_s0, %s1814_s21  }
 0x39c   :  { %1804 = dma.done.wait [#allocation4], 1024  }
 0x39d   :  { %1805 = vsyncadd [#allocation4], 4294966272 }
 0x39e   :  { %1403 = vsyncpa [#allocation3], 1 }
 0x39f   :  { %1404 = vsyncpa [#allocation6], 1 }
 0x3a0   :  { %1405 = vsyncpa [#allocation9], 1 }
 0x3a1   :  { %1406 = vsyncpa [#allocation12], 1 }
 0x3a2   :  { %1407 = vsyncpa [#allocation4], 1 }

</bundles_post_ra>
